<compile_context>
chip_gen: v7x
topology: tpu7x:2x2x1
jax: 0.10.0
libtpu: 0.0.40
codegen_flags: <defaults>
</compile_context>

<pallas_src>
import math
from functools import partial

import jax
import jax.numpy as jnp
import numpy as np
from jax import lax
from jax.experimental import pallas as pl
from jax.experimental.pallas import tpu as pltpu

_NEG_HALF_LOG_2PI = -0.5 * math.log(2.0 * math.pi)
# Contract the trailing dim of both operands (A @ B^T style).
_TRANS_B = (((1,), (1,)), ((), ()))


def _model_kernel(z_ref, xc_ref, w1t_ref, b1_ref, w2t_ref, b2_ref,
                  w3t_ref, b3_ref, out_ref, *, latent_dim, matmul_dtype,
                  precision):
    z = z_ref[0]                              # (TK, L)  native layout, f32
    xc = xc_ref[0]                            # (D, 1)   broadcast over lanes

    zf = z.astype(jnp.float32)
    z_mm = z.astype(matmul_dtype)

    # --- log p(z) under N(0, I): sum_l z^2 via a tiny trans_b matmul so the
    # reduced result is already lane-dense (1, TK); constants applied on the
    # reduced slab, not the (TK, L) one. ---
    ones_row = jnp.ones((1, latent_dim), jnp.float32)
    zsq_sum = lax.dot_general(ones_row, zf * zf, _TRANS_B,
                              preferred_element_type=jnp.float32,
                              precision=lax.Precision.HIGHEST)      # (1, TK)
    log_p_z = latent_dim * _NEG_HALF_LOG_2PI - 0.5 * zsq_sum

    # --- generative net in transposed layout: features on sublanes, samples
    # on lanes.  First matmul contracts the trailing latent dims of both
    # operands, so z never needs a wrapper-side HBM transpose. ---
    h1 = lax.dot_general(w1t_ref[...], z_mm, _TRANS_B,
                         preferred_element_type=jnp.float32,
                         precision=precision) + b1_ref[...]          # (H, TK)
    h1 = jnp.maximum(h1, 0.0)
    h2 = jnp.dot(w2t_ref[...], h1.astype(matmul_dtype),
                 preferred_element_type=jnp.float32,
                 precision=precision) + b2_ref[...]                  # (H, TK)
    h2 = jnp.maximum(h2, 0.0)
    logits = jnp.dot(w3t_ref[...], h2.astype(matmul_dtype),
                     preferred_element_type=jnp.float32,
                     precision=precision) + b3_ref[...]              # (D, TK)

    # --- log p(x|z) = -BCEWithLogits(logits, x), numerically stable, f32 ---
    neg_bce = -(jnp.maximum(logits, 0.0) - logits * xc
                + jnp.log1p(jnp.exp(-jnp.abs(logits))))
    log_p_x = jnp.sum(neg_bce, axis=0, keepdims=True)                # (1, TK)

    out_ref[0] = log_p_z + log_p_x                                   # (1, TK)


def _choose_k_tiling(batch, K, tile_k):
    """Pick a 128-aligned lane tile TK and tile count nk over the sample axis."""
    k128 = 128 * max(1, pl.cdiv(K, 128))          # lane-dense minimum
    tk_cap = max(128, (tile_k // 128) * 128)
    nk = max(1, pl.cdiv(k128, tk_cap))
    # v7x: make sure a 'parallel' grid axis has >= 2 steps to feed both TCs.
    if batch * nk < 2 and k128 >= 256:
        nk = 2
    tk = 128 * pl.cdiv(k128 // 128, nk)
    return tk, nk, tk * nk


def model_forward(z, x, params, *, tile_k=4096, matmul_dtype=jnp.bfloat16):
    """z: (B, K, L) f32, x: (B, D) -> (B, K, 1) f32 log-probability."""
    w1, b1, w2, b2, w3, b3 = params
    B, K, L = z.shape
    D = x.shape[-1]
    H = w1.shape[1]

    TK, nk, K_pad = _choose_k_tiling(B, K, tile_k)

    # z keeps its native (B, K, L) layout — no wrapper-side HBM transpose.
    # Zero-pad the sample axis only when K is not tile-aligned; padded lanes
    # compute harmless values that are sliced off below.
    zp = z if K_pad == K else jnp.pad(z, ((0, 0), (0, K_pad - K), (0, 0)))
    xc = x.astype(jnp.float32)[:, :, None]            # (B, D, 1), tiny

    w1t = w1.T.astype(matmul_dtype)                   # (H, L)
    w2t = w2.T.astype(matmul_dtype)                   # (H, H)
    w3t = w3.T.astype(matmul_dtype)                   # (D, H)
    b1c = b1.astype(jnp.float32).reshape(H, 1)
    b2c = b2.astype(jnp.float32).reshape(H, 1)
    b3c = b3.astype(jnp.float32).reshape(D, 1)

    precision = (lax.Precision.HIGHEST if matmul_dtype == jnp.float32
                 else lax.Precision.DEFAULT)

    def const(shape):
        return pl.BlockSpec(shape, lambda b, k: (0,) * len(shape))

    N = B * K_pad
    cost = pl.CostEstimate(
        flops=2 * N * (L * H + H * H + H * D + L),
        transcendentals=2 * N * D,
        bytes_accessed=(4 * (N * L + B * D + N)
                        + 2 * (L * H + H * H + H * D) + 4 * (2 * H + D)),
    )

    out = pl.pallas_call(
        partial(_model_kernel, latent_dim=L, matmul_dtype=matmul_dtype,
                precision=precision),
        out_shape=jax.ShapeDtypeStruct((B, 1, K_pad), jnp.float32),
        grid=(B, nk),
        in_specs=[
            pl.BlockSpec((1, TK, L), lambda b, k: (b, k, 0)),   # streamed z tile
            pl.BlockSpec((1, D, 1), lambda b, k: (b, 0, 0)),    # x column, reused over K
            const((H, L)), const((H, 1)),                       # weights stay VMEM resident
            const((H, H)), const((H, 1)),
            const((D, H)), const((D, 1)),
        ],
        out_specs=pl.BlockSpec((1, 1, TK), lambda b, k: (b, 0, k)),  # lane-dense
        compiler_params=pltpu.CompilerParams(
            dimension_semantics=("parallel", "parallel")),
        cost_estimate=cost,
    )(zp, xc, w1t, b1c, w2t, b2c, w3t, b3c)

    # TODO(synk): if the producer of z can emit bf16 directly, accept bf16 z
    # here to halve the dominant HBM stream (helps most on v5e).
    return jnp.transpose(out[:, :, :K], (0, 2, 1))    # (B, K, 1)


def init_params(key, latent_dim, data_dim):
    """Deterministic init mimicking nn.Linear default (U[-1/sqrt(fan_in), +])."""
    hidden = latent_dim * 2
    ks = jax.random.split(key, 6)

    def lin(kw, kb, fan_in, fan_out):
        bound = 1.0 / math.sqrt(fan_in)
        w = jax.random.uniform(kw, (fan_in, fan_out), jnp.float32, -bound, bound)
        b = jax.random.uniform(kb, (fan_out,), jnp.float32, -bound, bound)
        return w, b

    w1, b1 = lin(ks[0], ks[1], latent_dim, hidden)
    w2, b2 = lin(ks[2], ks[3], hidden, hidden)
    w3, b3 = lin(ks[4], ks[5], hidden, data_dim)
    return (w1, b1, w2, b2, w3, b3)


def reference_forward(z, x, params):
    """Pure-JAX f32 reference of the PyTorch Model.forward."""
    w1, b1, w2, b2, w3, b3 = params
    log_p_z = jnp.sum(-0.5 * jnp.log(2 * jnp.pi) - 0.5 * z * z,
                      axis=-1, keepdims=True)
    h = jnp.maximum(z @ w1 + b1, 0.0)
    h = jnp.maximum(h @ w2 + b2, 0.0)
    logits = h @ w3 + b3
    xb = jnp.broadcast_to(x[:, None, :], logits.shape)
    neg_bce = -(jnp.maximum(logits, 0.0) - logits * xb
                + jnp.log1p(jnp.exp(-jnp.abs(logits))))
    log_p_x = jnp.sum(neg_bce, axis=-1, keepdims=True)
    return log_p_z + log_p_x


if __name__ == "__main__":
    # Pin f32 matmul precision so the exact-layout check is generation-stable
    # (f32 MXU matmuls are multi-pass bf16 emulation; defaults vary by chip).
    jax.config.update("jax_default_matmul_precision", "highest")

    latent_dim = 16
    data_dim = 32
    batch = 2
    num_samples = 8   # importance samples per data point

    key = jax.random.PRNGKey(0)
    k_param, k_z, k_x = jax.random.split(key, 3)

    params = init_params(k_param, latent_dim, data_dim)
    z = jax.random.normal(k_z, (batch, num_samples, latent_dim), jnp.float32)
    x = (jax.random.uniform(k_x, (batch, data_dim)) > 0.5).astype(jnp.float32)

    ref = reference_forward(z, x, params)

    # Exact-layout check: f32 matmuls at HIGHEST precision vs f32 reference.
    out_f32 = jax.block_until_ready(
        model_forward(z, x, params, matmul_dtype=jnp.float32))
    np.testing.assert_allclose(np.asarray(out_f32), np.asarray(ref),
                               rtol=1e-5, atol=1e-5)

    # Performance configuration: bf16 MXU inputs, f32 accumulation / elementwise.
    out = jax.block_until_ready(
        model_forward(z, x, params, matmul_dtype=jnp.bfloat16))
    np.testing.assert_allclose(np.asarray(out), np.asarray(ref),
                               rtol=2e-2, atol=2e-1)

    assert out.shape == (batch, num_samples, 1)
    print("KERNEL_OK")
</pallas_src>

<mosaic_0001>
module attributes {stable_mosaic.version = 11 : i64} {
  func.func @_model_kernel(%arg0: i32, %arg1: i32, %arg2: memref<1x128x16xf32, #tpu.memory_space<vmem>>, %arg3: memref<1x32x1xf32, #tpu.memory_space<vmem>>, %arg4: memref<32x16xf32, #tpu.memory_space<vmem>>, %arg5: memref<32x1xf32, #tpu.memory_space<vmem>>, %arg6: memref<32x32xf32, #tpu.memory_space<vmem>>, %arg7: memref<32x1xf32, #tpu.memory_space<vmem>>, %arg8: memref<32x32xf32, #tpu.memory_space<vmem>>, %arg9: memref<32x1xf32, #tpu.memory_space<vmem>>, %arg10: memref<1x1x128xf32, #tpu.memory_space<vmem>>) attributes {dimension_semantics = [#tpu.dimension_semantics<parallel>, #tpu.dimension_semantics<parallel>], iteration_bounds = array<i64: 2, 1>, scalar_prefetch = 0 : i64, scratch_operands = 0 : i64, tpu.core_type = #tpu.core_type<tc>, window_params = [{transform_indices = @transform_0, window_bounds = array<i64: 1, 128, 16>}, {transform_indices = @transform_1, window_bounds = array<i64: 1, 32, 1>}, {pipeline_mode = #tpu.pipeline_mode<synchronous>, transform_indices = @transform_2, window_bounds = array<i64: 32, 16>}, {pipeline_mode = #tpu.pipeline_mode<synchronous>, transform_indices = @transform_3, window_bounds = array<i64: 32, 1>}, {pipeline_mode = #tpu.pipeline_mode<synchronous>, transform_indices = @transform_4, window_bounds = array<i64: 32, 32>}, {pipeline_mode = #tpu.pipeline_mode<synchronous>, transform_indices = @transform_5, window_bounds = array<i64: 32, 1>}, {pipeline_mode = #tpu.pipeline_mode<synchronous>, transform_indices = @transform_6, window_bounds = array<i64: 32, 32>}, {pipeline_mode = #tpu.pipeline_mode<synchronous>, transform_indices = @transform_7, window_bounds = array<i64: 32, 1>}, {transform_indices = @transform_8, window_bounds = array<i64: 1, 1, 128>}]} {
    %c0 = arith.constant 0 : index
    %c0_0 = arith.constant 0 : index
    %c0_1 = arith.constant 0 : index
    %0 = vector.load %arg2[%c0, %c0_0, %c0_1] : memref<1x128x16xf32, #tpu.memory_space<vmem>>, vector<1x128x16xf32>
    %1 = vector.shape_cast %0 : vector<1x128x16xf32> to vector<128x16xf32>
    %c0_2 = arith.constant 0 : index
    %c0_3 = arith.constant 0 : index
    %c0_4 = arith.constant 0 : index
    %2 = vector.load %arg3[%c0_2, %c0_3, %c0_4] : memref<1x32x1xf32, #tpu.memory_space<vmem>>, vector<1x32x1xf32>
    %3 = vector.shape_cast %2 : vector<1x32x1xf32> to vector<32x1xf32>
    %cst = arith.constant 1.000000e+00 : f32
    %4 = vector.broadcast %cst : f32 to vector<1x16xf32>
    %5 = arith.mulf %1, %1 : vector<128x16xf32>
    %cst_5 = arith.constant dense<0.000000e+00> : vector<1x128xf32>
    %6 = tpu.matmul %4, %5, %cst_5 {dimension_numbers = #tpu.dot_dimension_numbers<[1], [1], [0], [0], [0, 0, 1, 0], [], []>, precision = #tpu.contract_precision<fp32>} : vector<1x16xf32>, vector<128x16xf32>, vector<1x128xf32> -> vector<1x128xf32>
    %cst_6 = arith.constant 5.000000e-01 : f32
    %7 = vector.broadcast %cst_6 : f32 to vector<1x128xf32>
    %8 = arith.mulf %7, %6 : vector<1x128xf32>
    %cst_7 = arith.constant -14.7030163 : f32
    %9 = vector.broadcast %cst_7 : f32 to vector<1x128xf32>
    %10 = arith.subf %9, %8 : vector<1x128xf32>
    %c0_8 = arith.constant 0 : index
    %c0_9 = arith.constant 0 : index
    %11 = vector.load %arg4[%c0_8, %c0_9] : memref<32x16xf32, #tpu.memory_space<vmem>>, vector<32x16xf32>
    %cst_10 = arith.constant dense<0.000000e+00> : vector<32x128xf32>
    %12 = tpu.matmul %11, %1, %cst_10 {dimension_numbers = #tpu.dot_dimension_numbers<[1], [1], [0], [0], [0, 0, 1, 0], [], []>, precision = #tpu.contract_precision<fp32>} : vector<32x16xf32>, vector<128x16xf32>, vector<32x128xf32> -> vector<32x128xf32>
    %c0_11 = arith.constant 0 : index
    %c0_12 = arith.constant 0 : index
    %13 = vector.load %arg5[%c0_11, %c0_12] : memref<32x1xf32, #tpu.memory_space<vmem>>, vector<32x1xf32>
    %14 = vector.broadcast %13 : vector<32x1xf32> to vector<32x128xf32>
    %15 = arith.addf %12, %14 : vector<32x128xf32>
    %cst_13 = arith.constant 0.000000e+00 : f32
    %16 = vector.broadcast %cst_13 : f32 to vector<32x128xf32>
    %17 = arith.maximumf %15, %16 : vector<32x128xf32>
    %c0_14 = arith.constant 0 : index
    %c0_15 = arith.constant 0 : index
    %18 = vector.load %arg6[%c0_14, %c0_15] : memref<32x32xf32, #tpu.memory_space<vmem>>, vector<32x32xf32>
    %cst_16 = arith.constant dense<0.000000e+00> : vector<32x128xf32>
    %19 = tpu.matmul %18, %17, %cst_16 {dimension_numbers = #tpu.dot_dimension_numbers<[1], [0], [0], [1], [0, 0, 1, 1], [], []>, precision = #tpu.contract_precision<fp32>} : vector<32x32xf32>, vector<32x128xf32>, vector<32x128xf32> -> vector<32x128xf32>
    %c0_17 = arith.constant 0 : index
    %c0_18 = arith.constant 0 : index
    %20 = vector.load %arg7[%c0_17, %c0_18] : memref<32x1xf32, #tpu.memory_space<vmem>>, vector<32x1xf32>
    %21 = vector.broadcast %20 : vector<32x1xf32> to vector<32x128xf32>
    %22 = arith.addf %19, %21 : vector<32x128xf32>
    %cst_19 = arith.constant 0.000000e+00 : f32
    %23 = vector.broadcast %cst_19 : f32 to vector<32x128xf32>
    %24 = arith.maximumf %22, %23 : vector<32x128xf32>
    %c0_20 = arith.constant 0 : index
    %c0_21 = arith.constant 0 : index
    %25 = vector.load %arg8[%c0_20, %c0_21] : memref<32x32xf32, #tpu.memory_space<vmem>>, vector<32x32xf32>
    %cst_22 = arith.constant dense<0.000000e+00> : vector<32x128xf32>
    %26 = tpu.matmul %25, %24, %cst_22 {dimension_numbers = #tpu.dot_dimension_numbers<[1], [0], [0], [1], [0, 0, 1, 1], [], []>, precision = #tpu.contract_precision<fp32>} : vector<32x32xf32>, vector<32x128xf32>, vector<32x128xf32> -> vector<32x128xf32>
    %c0_23 = arith.constant 0 : index
    %c0_24 = arith.constant 0 : index
    %27 = vector.load %arg9[%c0_23, %c0_24] : memref<32x1xf32, #tpu.memory_space<vmem>>, vector<32x1xf32>
    %28 = vector.broadcast %27 : vector<32x1xf32> to vector<32x128xf32>
    %29 = arith.addf %26, %28 : vector<32x128xf32>
    %cst_25 = arith.constant 0.000000e+00 : f32
    %30 = vector.broadcast %cst_25 : f32 to vector<32x128xf32>
    %31 = arith.maximumf %29, %30 : vector<32x128xf32>
    %32 = vector.broadcast %3 : vector<32x1xf32> to vector<32x128xf32>
    %33 = arith.mulf %29, %32 : vector<32x128xf32>
    %34 = arith.subf %31, %33 : vector<32x128xf32>
    %35 = math.absf %29 : vector<32x128xf32>
    %cst_26 = arith.constant 0.000000e+00 : f32
    %36 = vector.broadcast %cst_26 : f32 to vector<32x128xf32>
    %37 = arith.subf %36, %35 : vector<32x128xf32>
    %38 = math.exp %37 : vector<32x128xf32>
    %39 = math.log1p %38 : vector<32x128xf32>
    %40 = arith.addf %34, %39 : vector<32x128xf32>
    %cst_27 = arith.constant 0.000000e+00 : f32
    %41 = vector.broadcast %cst_27 : f32 to vector<32x128xf32>
    %42 = arith.subf %41, %40 : vector<32x128xf32>
    %cst_28 = arith.constant dense<0.000000e+00> : vector<128xf32>
    %43 = vector.multi_reduction <add>, %42, %cst_28 [0] : vector<32x128xf32> to vector<128xf32>
    %44 = vector.shape_cast %43 : vector<128xf32> to vector<1x128xf32>
    %45 = arith.addf %10, %44 : vector<1x128xf32>
    %c0_29 = arith.constant 0 : index
    %c0_30 = arith.constant 0 : index
    %c0_31 = arith.constant 0 : index
    %46 = vector.load %arg10[%c0_29, %c0_30, %c0_31] : memref<1x1x128xf32, #tpu.memory_space<vmem>>, vector<1x1x128xf32>
    %47 = vector.shape_cast %46 : vector<1x1x128xf32> to vector<1x128xf32>
    %48 = vector.shape_cast %45 : vector<1x128xf32> to vector<1x1x128xf32>
    tpu.vector_store %arg10[%c0_29, %c0_30, %c0_31], %48 {strides = array<i32>} : memref<1x1x128xf32, #tpu.memory_space<vmem>>, vector<1x1x128xf32>,
    return
  }
  func.func @transform_0(%arg0: i32, %arg1: i32) -> (i32, i32, i32) {
    %c0_i32 = arith.constant 0 : i32
    %c0_i32_0 = arith.constant 0 : i32
    return %arg0, %arg1, %c0_i32 : i32, i32, i32
  }
  func.func @transform_1(%arg0: i32, %arg1: i32) -> (i32, i32, i32) {
    %c0_i32 = arith.constant 0 : i32
    %c0_i32_0 = arith.constant 0 : i32
    %c0_i32_1 = arith.constant 0 : i32
    return %arg0, %c0_i32, %c0_i32_0 : i32, i32, i32
  }
  func.func @transform_2(%arg0: i32, %arg1: i32) -> (i32, i32) {
    %c0_i32 = arith.constant 0 : i32
    %c0_i32_0 = arith.constant 0 : i32
    %c0_i32_1 = arith.constant 0 : i32
    return %c0_i32, %c0_i32_0 : i32, i32
  }
  func.func @transform_3(%arg0: i32, %arg1: i32) -> (i32, i32) {
    %c0_i32 = arith.constant 0 : i32
    %c0_i32_0 = arith.constant 0 : i32
    %c0_i32_1 = arith.constant 0 : i32
    return %c0_i32, %c0_i32_0 : i32, i32
  }
  func.func @transform_4(%arg0: i32, %arg1: i32) -> (i32, i32) {
    %c0_i32 = arith.constant 0 : i32
    %c0_i32_0 = arith.constant 0 : i32
    %c0_i32_1 = arith.constant 0 : i32
    return %c0_i32, %c0_i32_0 : i32, i32
  }
  func.func @transform_5(%arg0: i32, %arg1: i32) -> (i32, i32) {
    %c0_i32 = arith.constant 0 : i32
    %c0_i32_0 = arith.constant 0 : i32
    %c0_i32_1 = arith.constant 0 : i32
    return %c0_i32, %c0_i32_0 : i32, i32
  }
  func.func @transform_6(%arg0: i32, %arg1: i32) -> (i32, i32) {
    %c0_i32 = arith.constant 0 : i32
    %c0_i32_0 = arith.constant 0 : i32
    %c0_i32_1 = arith.constant 0 : i32
    return %c0_i32, %c0_i32_0 : i32, i32
  }
  func.func @transform_7(%arg0: i32, %arg1: i32) -> (i32, i32) {
    %c0_i32 = arith.constant 0 : i32
    %c0_i32_0 = arith.constant 0 : i32
    %c0_i32_1 = arith.constant 0 : i32
    return %c0_i32, %c0_i32_0 : i32, i32
  }
  func.func @transform_8(%arg0: i32, %arg1: i32) -> (i32, i32, i32) {
    %c0_i32 = arith.constant 0 : i32
    %c0_i32_0 = arith.constant 0 : i32
    return %arg0, %c0_i32, %arg1 : i32, i32, i32
  }
}

</mosaic_0001>

<bundles_post_ra>
// kernel: tpu_custom_call.1
= control target key start
LH: loop header
LB: loop body
LE: loop exit
PB: predicated region body
PF: predicated region fallthrough
CT: control target
= control target key end

     0   :  { %13 = vsyncpa [#allocation3], 0  ;;  %s6338_s0 = inlined_call_operand.vmem [shape: f32[2,128,16], index: 0, kind: input, shape index: {}]   ;;  %s6339_s1 = inlined_call_operand.vmem [shape: f32[2,32,1], index: 1, kind: input, shape index: {}]   ;;  %s6340_s2 = inlined_call_operand.vmem [shape: f32[32,16], index: 2, kind: input, shape index: {}]   ;;  %s6341_s3 = inlined_call_operand.vmem [shape: f32[32,1], index: 3, kind: input, shape index: {}]   ;;  %s6342_s4 = inlined_call_operand.vmem [shape: f32[32,32], index: 4, kind: input, shape index: {}]   ;;  %s6343_s5 = inlined_call_operand.vmem [shape: f32[32,1], index: 5, kind: input, shape index: {}]   ;;  %s6344_s6 = inlined_call_operand.vmem [shape: f32[32,32], index: 6, kind: input, shape index: {}]   ;;  %s6345_s7 = inlined_call_operand.vmem [shape: f32[32,1], index: 7, kind: input, shape index: {}]   ;;  %s6346_s8 = inlined_call_operand.hbm [shape: f32[2,1,128], index: 8, kind: output, shape index: {}]  }
   0x1   :  { %15 = vsyncpa [#allocation3 + $0x1], 0  ;;  %s5122_s27 = smov 0   ;;  %s5124_s28 = smov 0  }
   0x2   :  { %s5126_s29 = smov 0   ;;  %s5128_s30 = smov 0  }
   0x3   :  { %s5130_s9 = smov 0   ;;  %s5132_s10 = smov 0  }
   0x4 LB: > { %s3458_s11 = sadd.s32 4294967295, %s5069_s10   ;;  %s3459_s12 = sadd.s32 4294967294, %s5069_s10   ;;  %s5069_s10 = sphi %s5132_s10, %s21_s10   ;;  %s5065_s9 = sphi %s5130_s9, %s6570_s9   ;;  %s5061_s30 = sphi %s5128_s30, %s6569_s30   ;;  %s5057_s29 = sphi %s5126_s29, %s6568_s29   ;;  %s5053_s28 = sphi %s5124_s28, %s6567_s28   ;;  %s5049_s27 = sphi %s5122_s27, %s6566_s27  }
   0x5   : > { %s33_s13 = sadd.s32 1, %s5065_s9  ;;  %s222_s14 = sadd.s32 1, %s5057_s29 }
   0x6   : > { %p35_p0 = scmp.ge.s32.totalorder %s33_s13, 2  ;;  %p232_p1 = scmp.ne.s32.totalorder %s5057_s29, %s5053_s28 }
   0x7   : > { %p233_p2 = scmp.eq.s32.totalorder %s3458_s11, 1  ;;  %p238_p3 = scmp.ne.s32.totalorder %s5053_s28, %s5049_s27 }
   0x8   : > { %s6572_s13 = smov (%p35_p0, %s33_s13), 0  ;;  %p239_p5 = scmp.eq.s32.totalorder %s3459_s12, 1 }
   0x9   : > { %p5162_p4 = por %p233_p2, %p232_p1  ;;  %s217_s16 = ssub.s32 %s5065_s9, %s6572_s13 }
   0xa   : > { %p3462_p6 = scmp.ge.s32.totalorder %s5069_s10, 1  ;;  %p220_p7 = scmp.eq.s32.totalorder %s217_s16, 0 }
   0xb   : > { %p5169_p8 = por %p239_p5, %p238_p3  ;;  %p296_p9 = scmp.lt.s32.totalorder %s5069_s10, 3 }
   0xc   : > { %s5175_s18 = scalar_select %p220_p7, %s5057_s29, %s222_s14  }
   0xd   : > { %p297_p10 = pnand %p3462_p6, %p296_p9 }
   0xf   : > { %300 = sbr.rel (%p297_p10) target bundleno = 1244 (0x4dc), region = 52 }
  0x16   : > { %p339_p11 = scmp.lt.s32.totalorder %s5061_s30, 1  ;;  %v6369_v0 = vmov 0.0|0.0   ;;  %vm5072_vm0 = vmmov 0   ;;  %v6348_v1 = vmov 0.0   ;;  %v5074_v2 = vmov 0   ;;  %v1084_v36 = vld [vmem:[%s6340_s2] sm:$0xff] }
  0x17   : > { %4399 = vmatprep.subr.bf16.mxu0 %v6369_v0  ;;  %3825 = vmatprep.mubr.msk.f32.mxu0 %vm5072_vm0, %v6348_v1  ;;  %vm389_vm1 = vcmask 130048   ;;  %vm1974_vm2 = vcmask 261120  }
  0x18   : > { %s5182_s19 = scalar_select %p339_p11, %s5061_s30, 1  ;;  %4973 = vset.pattern.permute.xlu0 %v5074_v2  ;;  %4974 = vset.pattern.permute.xlu1 %v5074_v2  ;;  %v1113_v41 = vsel %vm389_vm1, %v1084_v36, 0 }
  0x19   : > { %v5291_v48 = vand.u32 4294901760, %v1113_v41 }
  0x1a   : > { %s3473_s20 = sshll.u32 %s5182_s19, 7  ;;  %s3474_s16 = sshll.u32 %s5182_s19, 5 }
  0x1b   : > { %s5190_s23 = scalar_lea.vmem %s6338_s0, %s3473_s20  ;;  %v5304_v57 = vsub.f32 %v1113_v41, %v5291_v48  ;;  %s352_s19 = scalar_lea.vmem %s6339_s1, %s3474_s16 }
  0x1c   : > { %v353_v3 = vld [vmem:[%s5190_s23] sm:$0xff]  ;;  %v354_v4 = vld [vmem:[%s5190_s23 + $0x8] sm:$0xff]  ;;  %v355_v5 = vld [vmem:[%s5190_s23 + $0x10] sm:$0xff]  ;;  %s336_s16 = sand.u32 1, %s5053_s28   ;;  %s3470_s20 = sshll.u32 %s5061_s30, 4 }
  0x1d   : > { %v5196_v6 = vsel %vm389_vm1, %v353_v3, 0  ;;  %v5199_v7 = vsel %vm389_vm1, %v354_v4, 0  ;;  %v373_v8 = vmul.f32 %v353_v3, %v353_v3  ;;  %v374_v9 = vmul.f32 %v354_v4, %v354_v4  ;;  %v356_v10 = vld [vmem:[%s5190_s23 + $0x18] sm:$0xff]  ;;  %v357_v15 = vld [vmem:[%s5190_s23 + $0x20] sm:$0xff]  ;;  %v358_v16 = vld [vmem:[%s5190_s23 + $0x28] sm:$0xff]  ;;  %s337_s21 = scalar_lea.vmem [#allocation2], %s336_s16  ;;  %s6291_s24 = scalar_lea.hbm %s6346_s8, %s3470_s20 }
  0x1e   : > { %v1173_v11 = vand.u32 4294901760, %v5196_v6  ;;  %v1176_v12 = vand.u32 4294901760, %v5199_v7  ;;  %v5205_v13 = vsel %vm389_vm1, %v355_v5, 0  ;;  %v5208_v14 = vsel %vm389_vm1, %v356_v10, 0  ;;  %v359_v39 = vld [vmem:[%s5190_s23 + $0x30] sm:$0xff]  ;;  %v360_v40 = vld [vmem:[%s5190_s23 + $0x38] sm:$0xff] }
  0x1f   : > { %v5213_v17 = vsel %vm389_vm1, %v373_v8, 0  ;;  %v5216_v18 = vsel %vm389_vm1, %v374_v9, 0  ;;  %v6363_v19 = vand.u32 4294901760, %v5205_v13  ;;  %v6356_v20 = vand.u32 4294901760, %v5208_v14  ;;  %v361_v55 = vld [vmem:[%s5190_s23 + $0x40] sm:$0xff]  ;;  %v362_v56 = vld [vmem:[%s5190_s23 + $0x48] sm:$0xff] }
  0x20   : > { %v5224_v21 = vpack.c.bf16 %v1176_v12, %v1173_v11  ;;  %v442_v22 = vand.u32 4294901760, %v5213_v17  ;;  %v445_v23 = vand.u32 4294901760, %v5216_v18  ;;  %v375_v24 = vmul.f32 %v355_v5, %v355_v5  ;;  %v365_v1 = vld [vmem:[%s5190_s23 + $0x60] sm:$0xff]  ;;  %s3376_s22 = sshll.u32 %s337_s21, 4  ;;  %s3363_s25 = scalar_lea.sflag [#allocation3], %s336_s16  ;;  %s6293_s22 = int_to_ptr.vmem [resolvable:$true] %s3376_s22 }
  0x21   : > { %v5232_v25 = vpack.c.bf16 %v6356_v20, %v6363_v19  ;;  %v376_v26 = vmul.f32 %v356_v10, %v356_v10  ;;  %v5235_v27 = vsel %vm389_vm1, %v357_v15, 0  ;;  %v5238_v28 = vsel %vm389_vm1, %v358_v16, 0  ;;  %v367_v19 = vld [vmem:[%s5190_s23 + $0x70] sm:$0xff]  ;;  %s4991_s26 = scalar_lea.vmem %s6293_s22, 16  ;;  %s5076_s30 = smov [#allocation2]  }
  0x22   : > { %6437 = vst [vmem:[#allocation5_spill] sm:$0xff] %v5224_v21  ;;  %4544 = vmatprep.subr.bf16.mxu1 %v5224_v21  ;;  %v5245_v29 = vpack.c.bf16 %v445_v23, %v442_v22  ;;  %v5248_v30 = vsel %vm389_vm1, %v375_v24, 0  ;;  %v6355_v34 = vand.u32 4294901760, %v5235_v27  ;;  %v6354_v35 = vand.u32 4294901760, %v5238_v28  ;;  %v364_v24 = vld [vmem:[%s5190_s23 + $0x58] sm:$0xff]  ;;  %p4992_p12 = scmp.ne.s32.totalorder %s6293_s22, %s4991_s26  ;;  %s4995_s11 = sshll.u32 %s5076_s30, 4  ;;  %s4996_s11 = int_to_ptr.vmem [resolvable:$false] %s4995_s11 }
  0x23   : > { %6438 = vst [vmem:[#allocation6_spill] sm:$0xff] %v5232_v25  ;;  %4546 = vmatpush3.bf16.xpose.msra.mxu1 %v5224_v21  ;;  %v5252_v31 = vsel %vm389_vm1, %v376_v26, 0  ;;  %v448_v32 = vand.u32 4294901760, %v5248_v30  ;;  %v377_v37 = vmul.f32 %v357_v15, %v357_v15  ;;  %v378_v38 = vmul.f32 %v358_v16, %v358_v16  ;;  %v363_v16 = vld [vmem:[%s5190_s23 + $0x50] sm:$0xff]  ;;  %s4997_s12 = scalar_lea.vmem %s4996_s11, 32  ;;  %p4998_p1 = scmp.lt.s32.totalorder %s6293_s22, %s4996_s11 }
  0x24   : > { %6439 = vst [vmem:[#allocation7_spill] sm:$0xff] %v5245_v29  ;;  %4401 = vmatpush3.bf16.xpose.msra.mxu0 %v5245_v29  ;;  %4548 = vmatprep.subr.bf16.mxu1 %v5232_v25  ;;  %v6366_v33 = vand.u32 4294901760, %v5252_v31  ;;  %v5277_v43 = vpack.c.bf16 %v6354_v35, %v6355_v34  ;;  %v5286_v46 = vsel %vm389_vm1, %v359_v39, 0  ;;  %v5289_v47 = vsel %vm389_vm1, %v360_v40, 0  ;;  %p4993_p13 = pnand %p4992_p12, %p5162_p4  ;;  %p4999_p2 = scmp.lt.s32.totalorder %s4997_s12, %s4991_s26 }
  0x25   : > { %4402 = vmatprep.subr.bf16.mxu0 %v6369_v0  ;;  %v5280_v44 = vsel %vm389_vm1, %v377_v37, 0  ;;  %v5283_v45 = vsel %vm389_vm1, %v378_v38, 0  ;;  %v6353_v51 = vand.u32 4294901760, %v5286_v46  ;;  %v6352_v52 = vand.u32 4294901760, %v5289_v47 }
  0x26   : > { %v5271_v42 = vpack.c.bf16 %v6366_v33, %v448_v32  ;;  %6441 = vst [vmem:[#allocation9_spill] sm:$0xff] %v5277_v43  ;;  %v6365_v49 = vand.u32 4294901760, %v5280_v44  ;;  %v6364_v50 = vand.u32 4294901760, %v5283_v45  ;;  %v379_v53 = vmul.f32 %v359_v39, %v359_v39  ;;  %v368_v33 = vld [vmem:[%s5190_s23 + $0x78] sm:$0xff]  ;;  %p4994_p0 = pneg %p4993_p13  ;;  %p5000_p3 = por %p4999_p2, %p4998_p1 }
  0x27   : > { %v380_v54 = vmul.f32 %v360_v40, %v360_v40  ;;  %v5316_v59 = vpack.c.bf16 %v6352_v52, %v6353_v51  ;;  %v5325_v62 = vsel %vm389_vm1, %v361_v55, 0  ;;  %v5328_v63 = vsel %vm389_vm1, %v362_v56, 0 }
  0x28   : > { %6440 = vst [vmem:[#allocation8_spill] sm:$0xff] %v5271_v42  ;;  %v5310_v58 = vpack.c.bf16 %v6364_v50, %v6365_v49  ;;  %v5319_v60 = vsel %vm389_vm1, %v379_v53, 0  ;;  %v6347_v3 = vand.u32 4294901760, %v5304_v57  ;;  %v6351_v8 = vand.u32 4294901760, %v5325_v62  ;;  %p5001_p5 = pnand %p5000_p3, %p4994_p0 }
  0x29   : > { %6443 = vst [vmem:[#allocation11_spill] sm:$0xff] %v5316_v59  ;;  %v5322_v61 = vsel %vm389_vm1, %v380_v54, 0  ;;  %v6362_v4 = vand.u32 4294901760, %v5319_v60  ;;  %v6350_v9 = vand.u32 4294901760, %v5328_v63  ;;  %v381_v10 = vmul.f32 %v361_v55, %v361_v55  ;;  %v1085_v54 = vld [vmem:[%s6340_s2 + $0x8] sm:$0xff] }
  0x2a   : > { %6442 = vst [vmem:[#allocation10_spill] sm:$0xff] %v5310_v58  ;;  %v6361_v5 = vand.u32 4294901760, %v5322_v61  ;;  %v382_v15 = vmul.f32 %v362_v56, %v362_v56  ;;  %v1256_v26 = vsub.f32 %v5304_v57, %v6347_v3  ;;  %v5363_v41 = vsel %vm389_vm1, %v363_v16, 0 }
  0x2b   : > { %4550 = vmatpush3.bf16.xpose.msra.mxu1 %v5232_v25  ;;  %v5354_v37 = vpack.c.bf16 %v6350_v9, %v6351_v8  ;;  %v5357_v39 = vsel %vm389_vm1, %v381_v10, 0  ;;  %v5366_v53 = vsel %vm389_vm1, %v364_v24, 0  ;;  %v6360_v10 = vand.u32 4294901760, %v5363_v41  ;;  %v1087_v9 = vld [vmem:[%s6340_s2 + $0x18] sm:$0xff]  ;;  %v366_v8 = vld [vmem:[%s5190_s23 + $0x68] sm:$0xff] }
  0x2c   : > { %4404 = vmatpush3.bf16.xpose.msra.mxu0 %v5271_v42  ;;  %4552 = vmatprep.subr.bf16.mxu1 %v5277_v43  ;;  %v5348_v36 = vpack.c.bf16 %v6361_v5, %v6362_v4  ;;  %v1257_v38 = vand.u32 4294901760, %v1256_v26  ;;  %v5360_v40 = vsel %vm389_vm1, %v382_v15, 0  ;;  %v6358_v55 = vand.u32 4294901760, %v5357_v39  ;;  %v1086_v26 = vld [vmem:[%s6340_s2 + $0x10] sm:$0xff] }
  0x2d   : > { %4405 = vmatprep.subr.bf16.mxu0 %v6369_v0  ;;  %6445 = vst [vmem:[#allocation13_spill] sm:$0xff] %v5354_v37  ;;  %v6357_v56 = vand.u32 4294901760, %v5360_v40  ;;  %v6359_v15 = vand.u32 4294901760, %v5366_v53  ;;  %v384_v3 = vmul.f32 %v364_v24, %v364_v24  ;;  %v1116_v52 = vsel %vm389_vm1, %v1085_v54, 0 }
  0x2e   : > { %6444 = vst [vmem:[#allocation12_spill] sm:$0xff] %v5348_v36  ;;  %4035 = vmatprep.mubr.f32.mxu1 %v1257_v38  ;;  %v383_v38 = vmul.f32 %v363_v16, %v363_v16  ;;  %v391_v51 = vsel %vm389_vm1, 1.0, %v5074_v2  ;;  %v1119_v35 = vsel %vm389_vm1, %v1086_v26, 0  ;;  %v5404_v24 = vsel %vm389_vm1, %v365_v1, 0 }
  0x2f   : > { %v5395_v34 = vpack.c.bf16 %v6357_v56, %v6358_v55  ;;  %v5401_v16 = vpack.c.bf16 %v6359_v15, %v6360_v10  ;;  %v1122_v54 = vsel %vm389_vm1, %v1087_v9, 0  ;;  %v5411_v26 = vsel %vm389_vm1, %v384_v3, 0 }
  0x30   : > { %v5408_v2 = vsel %vm389_vm1, %v383_v38, 0  ;;  %v5414_v20 = vsel %vm389_vm1, %v366_v8, 0  ;;  %v5416_v56 = vand.u32 4294901760, %v1116_v52  ;;  %v5418_v55 = vsub.f32 %v391_v51, %v391_v51 }
  0x31   : > { %6446 = vst [vmem:[#allocation14_spill] sm:$0xff] %v5395_v34  ;;  %6447 = vst [vmem:[#allocation15_spill] sm:$0xff] %v5401_v16  ;;  %v5422_v9 = vand.u32 4294901760, %v1119_v35  ;;  %v5424_v38 = vand.u32 4294901760, %v1122_v54  ;;  %v472_v3 = vand.u32 4294901760, %v5408_v2  ;;  %v6367_v10 = vand.u32 4294901760, %v5411_v26 }
  0x32   : > { %6448 = vst [vmem:[#allocation16_spill] sm:$0xff] %v5418_v55  ;;  %v6368_v51 = vand.u32 4294901760, %v5414_v20  ;;  %v385_v5 = vmul.f32 %v365_v1, %v365_v1  ;;  %v386_v4 = vmul.f32 %v366_v8, %v366_v8  ;;  %v5434_v50 = vsub.f32 %v1116_v52, %v5416_v56 }
  0x33   : > { %4554 = vmatpush3.bf16.xpose.msra.mxu1 %v5277_v43  ;;  %v5439_v49 = vsub.f32 %v5213_v17, %v442_v22  ;;  %v5445_v15 = vsub.f32 %v5196_v6, %v1173_v11  ;;  %v5450_v1 = vsub.f32 %v5199_v7, %v1176_v12  ;;  %v5456_v52 = vsub.f32 %v5216_v18, %v445_v23 }
  0x34   : > { %4407 = vmatpush3.bf16.xpose.msra.mxu0 %v5310_v58  ;;  %4556 = vmatprep.subr.bf16.mxu1 %v5316_v59  ;;  %v5461_v17 = vsub.f32 %v5248_v30, %v448_v32  ;;  %v5464_v6 = vsub.f32 %v1119_v35, %v5422_v9  ;;  %v5467_v11 = vsub.f32 %v1122_v54, %v5424_v38  ;;  %v6452_v12 = vand.u32 4294901760, %v5404_v24 }
  0x35   : > { %4408 = vmatprep.subr.bf16.mxu0 %v6369_v0  ;;  %6449 = vst [vmem:[#allocation17_spill] sm:$0xff] %v5445_v15  ;;  %6450 = vst [vmem:[#allocation18_spill] sm:$0xff] %v5450_v1  ;;  %v5471_v7 = vpack.c.bf16 %v6367_v10, %v472_v3  ;;  %v430_v22 = vsel %vm389_vm1, %v385_v5, 0  ;;  %v5481_v23 = vsel %vm389_vm1, %v367_v19, 0  ;;  %v433_v30 = vsel %vm389_vm1, %v386_v4, 0 }
  0x36   : > { %v5477_v18 = vpack.c.bf16 %v6368_v51, %v6452_v12  ;;  %v5485_v32 = vsel %vm389_vm1, %v368_v33, 0  ;;  %v387_v35 = vmul.f32 %v367_v19, %v367_v19  ;;  %v388_v54 = vmul.f32 %v368_v33, %v368_v33 }
  0x37   : > { %6451 = vst [vmem:[#allocation19_spill] sm:$0xff] %v5471_v7  ;;  %v6454_v10 = vand.u32 4294901760, %v5252_v31  ;;  %v481_v5 = vand.u32 4294901760, %v433_v30  ;;  %v6461_v12 = vmov 0.0|0.0   ;;  %v6471_v58 = vand.u32 4294901760, %v5481_v23 }
  0x38   : > { %6453 = vst [vmem:[#allocation20_spill] sm:$0xff] %v5477_v18  ;;  %v6475_v42 = vand.u32 4294901760, %v5418_v55 }
  0x39   : > { %v5490_v8 = vsub.f32 %v5252_v31, %v6454_v10  ;;  %v478_v10 = vand.u32 4294901760, %v430_v22  ;;  %v6460_v31 = vand.u32 4294901760, %v5322_v61 }
  0x3a   : > { %v5577_v25 = vsub.f32 %v5418_v55, %v6475_v42  ;;  %v6477_v42 = vand.u32 4294901760, %v5411_v26 }
  0x3b   : > { %4558 = vmatpush3.bf16.xpose.msra.mxu1 %v5316_v59  ;;  %v5524_v33 = vsub.f32 %v5322_v61, %v6460_v31  ;;  %v6465_v31 = vand.u32 4294901760, %v5357_v39 }
  0x3c   : > { %4410 = vmatpush3.bf16.xpose.msra.mxu0 %v5348_v36  ;;  %4560 = vmatprep.subr.bf16.mxu1 %v5354_v37 }
  0x3d   : > { %4411 = vmatprep.subr.bf16.mxu0 %v6369_v0 }
  0x43   : > { %4562 = vmatpush3.bf16.xpose.msra.mxu1 %v5354_v37  ;;  %v6464_v37 = vand.u32 4294901760, %v5439_v49 }
  0x44   : > { %4413 = vmatpush3.bf16.xpose.msra.mxu0 %v5395_v34  ;;  %4564 = vmatprep.subr.bf16.mxu1 %v5401_v16  ;;  %v6456_v34 = vand.u32 4294901760, %v5283_v45 }
  0x45   : > { %4414 = vmatprep.subr.bf16.mxu0 %v6369_v0  ;;  %v6455_v0 = vand.u32 4294901760, %v5280_v44  ;;  %v536_v61 = vsub.f32 %v5439_v49, %v6464_v37  ;;  %v5557_v37 = vpack.c.bf16 %v481_v5, %v478_v10 }
  0x46   : > { %v5503_v19 = vsub.f32 %v5283_v45, %v6456_v34  ;;  %v6459_v34 = vand.u32 4294901760, %v5319_v60 }
  0x47   : > { %v5498_v4 = vsub.f32 %v5280_v44, %v6455_v0  ;;  %v6457_v44 = vand.u32 4294901760, %v5205_v13  ;;  %v439_v0 = vsel %vm389_vm1, %v388_v54, 0  ;;  %v6466_v54 = vand.u32 4294901760, %v5360_v40  ;;  %6470 = vst [vmem:[#allocation23_spill] sm:$0xff] %v5557_v37 }
  0x48   : > { %v5519_v45 = vsub.f32 %v5319_v60, %v6459_v34  ;;  %v6468_v34 = vand.u32 4294901760, %v5208_v14  ;;  %v537_v21 = vand.u32 4294901760, %v536_v61 }
  0x49   : > { %v5514_v51 = vsub.f32 %v5205_v13, %v6457_v44  ;;  %v6463_v44 = vand.u32 4294901760, %v5450_v1  ;;  %v5547_v36 = vsub.f32 %v5360_v40, %v6466_v54  ;;  %v6473_v54 = vand.u32 4294901760, %v5235_v27 }
  0x4a   : > { %v5555_v59 = vsub.f32 %v5208_v14, %v6468_v34  ;;  %v487_v34 = vand.u32 4294901760, %v439_v0 }
  0x4b   : > { %4566 = vmatpush3.bf16.xpose.msra.mxu1 %v5401_v16  ;;  %6458 = vst [vmem:[#allocation21_spill] sm:$0xff] %v5514_v51  ;;  %v6462_v16 = vand.u32 4294901760, %v5445_v15  ;;  %v1304_v60 = vsub.f32 %v5450_v1, %v6463_v44  ;;  %v5569_v43 = vsub.f32 %v5235_v27, %v6473_v54  ;;  %v5604_v54 = vsub.f32 %v430_v22, %v478_v10 }
  0x4c   : > { %4416 = vmatpush3.bf16.xpose.msra.mxu0 %v5471_v7  ;;  %4568 = vmatprep.subr.bf16.mxu1 %v5477_v18  ;;  %v436_v7 = vsel %vm389_vm1, %v387_v35, 0  ;;  %v5542_v35 = vsub.f32 %v5357_v39, %v6465_v31  ;;  %6469 = vst [vmem:[#allocation22_spill] sm:$0xff] %v5555_v59  ;;  %v6472_v39 = vand.u32 4294901760, %v5485_v32 }
  0x4d   : > { %4417 = vmatprep.subr.bf16.mxu0 %v6461_v12  ;;  %v1297_v13 = vsub.f32 %v5445_v15, %v6462_v16  ;;  %v6467_v16 = vand.u32 4294901760, %v5456_v52  ;;  %6474 = vst [vmem:[#allocation24_spill] sm:$0xff] %v5569_v43  ;;  %v484_v14 = vand.u32 4294901760, %v436_v7 }
  0x4e   : > { %v5563_v31 = vpack.c.bf16 %v6472_v39, %v6471_v58  ;;  %v1305_v58 = vand.u32 4294901760, %v1304_v60  ;;  %v6476_v39 = vand.u32 4294901760, %v5434_v50  ;;  %v6478_v60 = vand.u32 4294901760, %v5514_v51 }
  0x4f   : > { %v543_v44 = vsub.f32 %v5456_v52, %v6467_v16  ;;  %v5572_v16 = vsub.f32 %v5408_v2, %v472_v3  ;;  %v1298_v29 = vand.u32 4294901760, %v1297_v13  ;;  %v5591_v13 = vsub.f32 %v5411_v26, %v6477_v42 }
  0x50   : > { %v5582_v40 = vsub.f32 %v5434_v50, %v6476_v39  ;;  %v1311_v61 = vsub.f32 %v5514_v51, %v6478_v60  ;;  %v6479_v39 = vand.u32 4294901760, %v5238_v28  ;;  %v5606_v2 = vsub.f32 %v433_v30, %v481_v5 }
  0x51   : > { %v544_v27 = vand.u32 4294901760, %v543_v44  ;;  %v5609_v26 = vpack.c.bf16 %v487_v34, %v484_v14  ;;  %v5611_v42 = vsub.f32 %v436_v7, %v484_v14  ;;  %v4575_v60 = vpack.c.bf16 %v1305_v58, %v1298_v29 }
  0x52   : > { %v5602_v3 = vsub.f32 %v5238_v28, %v6479_v39  ;;  %v1267_v44 = vand.u32 4294901760, %v5582_v40  ;;  %v6482_v28 = vand.u32 4294901760, %v5555_v59  ;;  %v6483_v30 = vand.u32 4294901760, %v5461_v17 }
  0x53   : > { %4570 = vmatpush3.bf16.xpose.msra.mxu1 %v5477_v18  ;;  %6481 = vst [vmem:[#allocation26_spill] sm:$0xff] %v5609_v26  ;;  %v526_v18 = vand.u32 4294901760, %v5577_v25  ;;  %v4424_v55 = vpack.c.bf16 %v544_v27, %v537_v21  ;;  %v6484_v7 = vand.u32 4294901760, %v5490_v8  ;;  %v1312_v29 = vand.u32 4294901760, %v1311_v61 }
  0x54   : > { %4419 = vmatpush3.bf16.xpose.msra.mxu0 %v5557_v37  ;;  %4572 = vmatprep.subr.bf16.mxu1 %v5563_v31  ;;  %6480 = vst [vmem:[#allocation25_spill] sm:$0xff] %v5602_v3  ;;  %v5613_v37 = vsub.f32 %v439_v0, %v487_v34  ;;  %v1318_v22 = vsub.f32 %v5555_v59, %v6482_v28  ;;  %v6485_v0 = vand.u32 4294901760, %v5569_v43  ;;  %v6486_v40 = vand.u32 4294901760, %v5286_v46 }
  0x55   : > { %4420 = vmatprep.subr.bf16.mxu0 %v6461_v12  ;;  %v5623_v5 = vsub.f32 %v5461_v17, %v6483_v30  ;;  %v5628_v10 = vsub.f32 %v5490_v8, %v6484_v7  ;;  %v6487_v34 = vand.u32 4294901760, %v5289_v47  ;;  %v6488_v27 = vand.u32 4294901760, %v5325_v62 }
  0x56   : > { %v5633_v25 = vsub.f32 %v5569_v43, %v6485_v0  ;;  %v5639_v14 = vsub.f32 %v5286_v46, %v6486_v40  ;;  %v6489_v39 = vand.u32 4294901760, %v5328_v63  ;;  %v6401_v30 = vand.u32 4294901760, %v5464_v6 }
  0x57   : > { %v5644_v58 = vsub.f32 %v5289_v47, %v6487_v34  ;;  %v5649_v61 = vsub.f32 %v5325_v62, %v6488_v27  ;;  %v6490_v46 = vand.u32 4294901760, %v5363_v41  ;;  %v6491_v47 = vand.u32 4294901760, %v5366_v53 }
  0x58   : > { %v5654_v28 = vsub.f32 %v5328_v63, %v6489_v39  ;;  %v6402_v62 = vand.u32 4294901760, %v5467_v11  ;;  %v5670_v40 = vpack.c.bf16 %v5450_v1, %v5445_v15  ;;  %v6492_v63 = vand.u32 4294901760, %v5404_v24 }
  0x59   : > { %v5660_v7 = vsub.f32 %v5363_v41, %v6490_v46  ;;  %v5665_v0 = vsub.f32 %v5366_v53, %v6491_v47  ;;  %v6493_v41 = vand.u32 4294901760, %v5414_v20  ;;  %v5687_v39 = vpack.c.bf16 %v5555_v59, %v5514_v51 }
  0x5a   : > { %v5676_v34 = vsub.f32 %v5404_v24, %v6492_v63  ;;  %v1319_v46 = vand.u32 4294901760, %v1318_v22  ;;  %v6494_v47 = vand.u32 4294901760, %v5481_v23  ;;  %v6495_v63 = vand.u32 4294901760, %v5485_v32 }
  0x5b   : > { %4574 = vmatpush3.bf16.xpose.msra.mxu1 %v5563_v31  ;;  %v5681_v27 = vsub.f32 %v5414_v20, %v6493_v41  ;;  %v1276_v53 = vsub.f32 %v5464_v6, %v6401_v30  ;;  %v5708_v22 = vpack.c.bf16 %v5602_v3, %v5569_v43  ;;  %v5723_v30 = vpack.c.bf16 %v5654_v28, %v5649_v61 }
  0x5c   : > { %4422 = vmatpush3.bf16.xpose.msra.mxu0 %v5609_v26  ;;  %4576 = vmatprep.subr.bf16.mxu1 %v4575_v60  ;;  %v5693_v24 = vsub.f32 %v5481_v23, %v6494_v47  ;;  %v5698_v20 = vsub.f32 %v5485_v32, %v6495_v63  ;;  %v5714_v32 = vpack.c.bf16 %v5644_v58, %v5639_v14  ;;  %v6496_v59 = vand.u32 4294901760, %v5602_v3 }
  0x5d   : > { %4423 = vmatprep.subr.bf16.mxu0 %v6461_v12  ;;  %v1286_v47 = vsub.f32 %v5467_v11, %v6402_v62  ;;  %v5729_v23 = vpack.c.bf16 %v5665_v0, %v5660_v7  ;;  %v5735_v62 = vpack.c.bf16 %v5681_v27, %v5676_v34  ;;  %v4579_v43 = vpack.c.bf16 %v1319_v46, %v1312_v29 }
  0x5e   : > { %v1332_v51 = vsub.f32 %v5602_v3, %v6496_v59  ;;  %v5744_v41 = vpack.c.bf16 %v5698_v20, %v5693_v24  ;;  %v1277_v21 = vand.u32 4294901760, %v1276_v53  ;;  %v551_v15 = vand.u32 4294901760, %v5623_v5 }
  0x5f   : > { %v1287_v1 = vand.u32 4294901760, %v1286_v47  ;;  %v558_v29 = vand.u32 4294901760, %v5628_v10  ;;  %v6434_v46 = vand.u32 4294901760, %v5498_v4  ;;  %v6411_v59 = vand.u32 4294901760, %v5503_v19 }
  0x60   : > { %v1326_v63 = vand.u32 4294901760, %v5633_v25  ;;  %v1333_v3 = vand.u32 4294901760, %v1332_v51  ;;  %v6413_v26 = vand.u32 4294901760, %v5639_v14  ;;  %v6414_v53 = vand.u32 4294901760, %v5519_v45 }
  0x61   : > { %v4427_v51 = vpack.c.bf16 %v558_v29, %v551_v15  ;;  %v6415_v47 = vand.u32 4294901760, %v5524_v33 }
  0x62   : > { %4036 = vmatmul.mubr.f32.vlgmr.msra.gmra.mrb[0].mxu1 %v1267_v44  ;;  %v6412_v44 = vand.u32 4294901760, %v5644_v58  ;;  %v4583_v5 = vpack.c.bf16 %v1333_v3, %v1326_v63  ;;  %v1339_v10 = vsub.f32 %v5639_v14, %v6413_v26  ;;  %v6417_v3 = vand.u32 4294901760, %v5649_v61 }
  0x63   : > { %4578 = vmatpush3.bf16.xpose.msra.mxu1 %v4575_v60  ;;  %3826 = vmatmul.mubr.f32.vlgmr.msra.gmra.mrb[0].mxu0 %v526_v18  ;;  %v6497_v18 = vmov 0.0   ;;  %v564_v60 = vsub.f32 %v5498_v4, %v6434_v46  ;;  %v6416_v63 = vand.u32 4294901760, %v5654_v28  ;;  %v585_v29 = vsub.f32 %v5524_v33, %v6415_v47 }
  0x64   : > { %4425 = vmatpush3.bf16.xpose.msra.mxu0 %v4424_v55  ;;  %4580 = vmatprep.subr.bf16.mxu1 %v4579_v43  ;;  %v571_v55 = vsub.f32 %v5503_v19, %v6411_v59  ;;  %v1340_v59 = vand.u32 4294901760, %v1339_v10  ;;  %v6418_v26 = vand.u32 4294901760, %v5542_v35 }
  0x65   : > { %4426 = vmatprep.subr.bf16.mxu0 %v6461_v12  ;;  %4038 = vmatprep.mubr.f32.mxu1 %v1277_v21  ;;  %v565_v25 = vand.u32 4294901760, %v564_v60  ;;  %v1360_v10 = vsub.f32 %v5654_v28, %v6416_v63 }
  0x66   : > { %4039 = vmatmul.mubr.f32.gmra.mrb[2].mxu1 %v1287_v1  ;;  %3860 = vmatprep.mubr.msk.f32.mxu0 %vm5072_vm0, %v6497_v18  ;;  %v1346_v1 = vsub.f32 %v5644_v58, %v6412_v44  ;;  %v572_v21 = vand.u32 4294901760, %v571_v55  ;;  %v586_v44 = vand.u32 4294901760, %v585_v29 }
  0x67   : > { %4073 = vmatprep.mubr.f32.mxu1 %v5291_v48 }
  0x68   : > { %v1347_v15 = vand.u32 4294901760, %v1346_v1  ;;  %v4430_v60 = vpack.c.bf16 %v572_v21, %v565_v25  ;;  %v1361_v25 = vand.u32 4294901760, %v1360_v10  ;;  %v6420_v21 = vand.u32 4294901760, %v5665_v0 }
  0x6a   : > { %v4587_v55 = vpack.c.bf16 %v1347_v15, %v1340_v59  ;;  %v6421_v59 = vand.u32 4294901760, %v5660_v7 }
  0x6b   : > { %4582 = vmatpush3.bf16.xpose.msra.mxu1 %v4579_v43  ;;  %v578_v43 = vsub.f32 %v5519_v45, %v6414_v53  ;;  %v6419_v53 = vand.u32 4294901760, %v5547_v36 }
  0x6c   : > { %4428 = vmatpush3.bf16.xpose.msra.mxu0 %v4427_v51  ;;  %4584 = vmatprep.subr.bf16.mxu1 %v4583_v5  ;;  %v1353_v51 = vsub.f32 %v5649_v61, %v6417_v3  ;;  %v6422_v3 = vand.u32 4294901760, %v5572_v16 }
  0x6d   : > { %4429 = vmatprep.subr.bf16.mxu0 %v6461_v12  ;;  %v579_v1 = vand.u32 4294901760, %v578_v43  ;;  %v599_v15 = vsub.f32 %v5547_v36, %v6419_v53 }
  0x6e   : > { %v1354_v47 = vand.u32 4294901760, %v1353_v51  ;;  %v1374_v51 = vsub.f32 %v5665_v0, %v6420_v21 }
  0x6f   : > { %v4433_v43 = vpack.c.bf16 %v586_v44, %v579_v1  ;;  %v600_v63 = vand.u32 4294901760, %v599_v15  ;;  %v6426_v1 = vand.u32 4294901760, %v5681_v27 }
  0x70   : > { %v4591_v29 = vpack.c.bf16 %v1361_v25, %v1354_v47  ;;  %v1375_v44 = vand.u32 4294901760, %v1374_v51  ;;  %v6433_v47 = vand.u32 4294901760, %v5676_v34 }
  0x73   : > { %4586 = vmatpush3.bf16.xpose.msra.mxu1 %v4583_v5  ;;  %v592_v5 = vsub.f32 %v5542_v35, %v6418_v26  ;;  %v6423_v26 = vand.u32 4294901760, %v5591_v13 }
  0x74   : > { %4431 = vmatpush3.bf16.xpose.msra.mxu0 %v4430_v60  ;;  %4588 = vmatprep.subr.bf16.mxu1 %v4587_v55  ;;  %v1367_v60 = vsub.f32 %v5660_v7, %v6421_v59  ;;  %v6424_v59 = vand.u32 4294901760, %v5604_v54 }
  0x75   : > { %4432 = vmatprep.subr.bf16.mxu0 %v6461_v12  ;;  %v593_v10 = vand.u32 4294901760, %v592_v5  ;;  %v613_v25 = vsub.f32 %v5591_v13, %v6423_v26 }
  0x76   : > { %v1368_v53 = vand.u32 4294901760, %v1367_v60  ;;  %v1388_v60 = vsub.f32 %v5681_v27, %v6426_v1 }
  0x77   : > { %v4436_v5 = vpack.c.bf16 %v600_v63, %v593_v10  ;;  %v614_v21 = vand.u32 4294901760, %v613_v25  ;;  %v6432_v10 = vand.u32 4294901760, %v5698_v20 }
  0x78   : > { %v4595_v15 = vpack.c.bf16 %v1375_v44, %v1368_v53  ;;  %v1389_v63 = vand.u32 4294901760, %v1388_v60  ;;  %v6427_v53 = vand.u32 4294901760, %v5693_v24 }
  0x7b   : > { %4590 = vmatpush3.bf16.xpose.msra.mxu1 %v4587_v55  ;;  %v606_v55 = vsub.f32 %v5572_v16, %v6422_v3  ;;  %v6425_v3 = vand.u32 4294901760, %v5606_v2 }
  0x7c   : > { %4434 = vmatpush3.bf16.xpose.msra.mxu0 %v4433_v43  ;;  %4592 = vmatprep.subr.bf16.mxu1 %v4591_v29  ;;  %v1381_v43 = vsub.f32 %v5676_v34, %v6433_v47  ;;  %v6531_v47 = vld [vmem:[#allocation22_spill] sm:$0xff] }
  0x7d   : > { %4435 = vmatprep.subr.bf16.mxu0 %v6461_v12  ;;  %v607_v51 = vand.u32 4294901760, %v606_v55  ;;  %v627_v25 = vsub.f32 %v5606_v2, %v6425_v3  ;;  %v6532_v46 = vand.u32 4294901760, %v6531_v47  ;;  %v6539_v47 = vld [vmem:[#allocation24_spill] sm:$0xff] }
  0x7e   : > { %v1382_v26 = vand.u32 4294901760, %v1381_v43  ;;  %v1402_v43 = vsub.f32 %v5698_v20, %v6432_v10 }
  0x7f   : > { %v4439_v44 = vpack.c.bf16 %v614_v21, %v607_v51  ;;  %v6431_v21 = vand.u32 4294901760, %v5611_v42  ;;  %v628_v51 = vand.u32 4294901760, %v627_v25 }
  0x80   : > { %v4599_v55 = vpack.c.bf16 %v1389_v63, %v1382_v26  ;;  %v1403_v63 = vand.u32 4294901760, %v1402_v43  ;;  %v6509_v43 = vld [vmem:[#allocation6_spill] sm:$0xff] }
  0x83   : > { %4594 = vmatpush3.bf16.xpose.msra.mxu1 %v4591_v29  ;;  %v620_v29 = vsub.f32 %v5604_v54, %v6424_v59  ;;  %v6430_v59 = vand.u32 4294901760, %v5613_v37 }
  0x84   : > { %4437 = vmatpush3.bf16.xpose.msra.mxu0 %v4436_v5  ;;  %4596 = vmatprep.subr.bf16.mxu1 %v4595_v15  ;;  %v1395_v5 = vsub.f32 %v5693_v24, %v6427_v53  ;;  %v634_v53 = vsub.f32 %v5611_v42, %v6431_v21  ;;  %v6529_v21 = vld [vmem:[#allocation21_spill] sm:$0xff] }
  0x85   : > { %4438 = vmatprep.subr.bf16.mxu0 %v6461_v12  ;;  %v621_v60 = vand.u32 4294901760, %v620_v29  ;;  %v6530_v10 = vand.u32 4294901760, %v6529_v21  ;;  %v6541_v21 = vld [vmem:[#allocation25_spill] sm:$0xff] }
  0x86   : > { %v1396_v26 = vand.u32 4294901760, %v1395_v5  ;;  %v6428_v5 = vmov 1.0  }
  0x87   : > { %v4442_v3 = vpack.c.bf16 %v628_v51, %v621_v60  ;;  %v6511_v60 = vld [vmem:[#allocation8_spill] sm:$0xff]  ;;  %v6512_v51 = vld [vmem:[#allocation9_spill] sm:$0xff] }
  0x88   : > { %v4603_v1 = vpack.c.bf16 %v1403_v63, %v1396_v26  ;;  %v6513_v26 = vld [vmem:[#allocation10_spill] sm:$0xff]  ;;  %v6514_v63 = vld [vmem:[#allocation11_spill] sm:$0xff] }
  0x8b   : > { %4598 = vmatpush3.bf16.xpose.msra.mxu1 %v4595_v15  ;;  %v641_v15 = vsub.f32 %v5613_v37, %v6430_v59 }
  0x8c   : > { %4440 = vmatpush3.bf16.xpose.msra.mxu0 %v4439_v44  ;;  %4600 = vmatprep.subr.bf16.mxu1 %v4599_v55  ;;  %v635_v44 = vand.u32 4294901760, %v634_v53  ;;  %v6506_v53 = vld [vmem:[#allocation5_spill] sm:$0xff] }
  0x8d   : > { %4441 = vmatprep.subr.bf16.mxu0 %v6461_v12  ;;  %v642_v29 = vand.u32 4294901760, %v641_v15  ;;  %v6516_v15 = vld [vmem:[#allocation13_spill] sm:$0xff] }
  0x8f   : > { %v4445_v25 = vpack.c.bf16 %v642_v29, %v635_v44  ;;  %v6517_v44 = vld [vmem:[#allocation14_spill] sm:$0xff]  ;;  %v6518_v29 = vld [vmem:[#allocation15_spill] sm:$0xff] }
  0x93   : > { %4602 = vmatpush3.bf16.xpose.msra.mxu1 %v4599_v55  ;;  %v6508_v55 = vld [vmem:[#allocation7_spill] sm:$0xff] }
  0x94   : > { %4443 = vmatpush3.bf16.xpose.msra.mxu0 %v4442_v3  ;;  %4604 = vmatprep.subr.bf16.mxu1 %v4603_v1  ;;  %v6498_v3 = vpack.c.bf16 %v5456_v52, %v5439_v49 }
  0x95   : > { %4444 = vmatprep.subr.bf16.mxu0 %v6461_v12 }
  0x9b   : > { %4606 = vmatpush3.bf16.xpose.msra.mxu1 %v4603_v1  ;;  %v6500_v1 = vpack.c.bf16 %v5503_v19, %v5498_v4 }
  0x9c   : > { %4446 = vmatpush3.bf16.xpose.msra.mxu0 %v4445_v25  ;;  %4608 = vmatprep.subr.bf16.mxu1 %v5670_v40  ;;  %v6519_v25 = vld [vmem:[#allocation19_spill] sm:$0xff] }
  0x9d   : > { %4447 = vmatprep.subr.bf16.mxu0 %v6461_v12 }
  0xa2   : > { %4074 = vmatmul.mubr.f32.vlgmr.msra.gmra.mrb[0].mxu1 %v5416_v56 }
  0xa3   : > { %4610 = vmatpush3.bf16.xpose.msra.mxu1 %v5670_v40  ;;  %3861 = vmatmul.mubr.msk.f32.vlgmr.msra.gmra.mrb[0].mxu0 %vm389_vm1, %v6428_v5  ;;  %v6499_v40 = vpack.c.bf16 %v5490_v8, %v5461_v17  ;;  %v6528_v5 = vand.u32 4294901760, %v5456_v52  ;;  %v6536_v52 = vand.u32 4294901760, %v5467_v11 }
  0xa4   : > { %4449 = vmatpush3.bf16.xpose.msra.mxu0 %v6498_v3  ;;  %4612 = vmatprep.subr.bf16.mxu1 %v5687_v39  ;;  %v6520_v3 = vld [vmem:[#allocation20_spill] sm:$0xff] }
  0xa5   : > { %4450 = vmatprep.subr.bf16.mxu0 %v6461_v12  ;;  %4076 = vmatprep.mubr.f32.mxu1 %v5422_v9 }
  0xa6   : > { %4077 = vmatmul.mubr.f32.gmra.mrb[2].mxu1 %v5424_v38  ;;  %3895 = vmatprep.mubr.msk.f32.mxu0 %vm5072_vm0, %v6497_v18 }
  0xa7   : > { %4111 = vmatprep.mubr.f32.mxu1 %v5304_v57 }
  0xab   : > { %4614 = vmatpush3.bf16.xpose.msra.mxu1 %v5687_v39  ;;  %v6501_v39 = vpack.c.bf16 %v5524_v33, %v5519_v45 }
  0xac   : > { %4452 = vmatpush3.bf16.xpose.msra.mxu0 %v6499_v40  ;;  %4616 = vmatprep.subr.bf16.mxu1 %v5708_v22  ;;  %v6521_v40 = vld [vmem:[#allocation23_spill] sm:$0xff] }
  0xad   : > { %4453 = vmatprep.subr.bf16.mxu0 %v6461_v12 }
  0xb3   : > { %4618 = vmatpush3.bf16.xpose.msra.mxu1 %v5708_v22  ;;  %v6502_v22 = vpack.c.bf16 %v5547_v36, %v5542_v35 }
  0xb4   : > { %4455 = vmatpush3.bf16.xpose.msra.mxu0 %v6500_v1  ;;  %4620 = vmatprep.subr.bf16.mxu1 %v5714_v32  ;;  %v6522_v1 = vld [vmem:[#allocation17_spill] sm:$0xff] }
  0xb5   : > { %4456 = vmatprep.subr.bf16.mxu0 %v6461_v12 }
  0xbb   : > { %4622 = vmatpush3.bf16.xpose.msra.mxu1 %v5714_v32  ;;  %v6503_v32 = vpack.c.bf16 %v5591_v13, %v5572_v16 }
  0xbc   : > { %4458 = vmatpush3.bf16.xpose.msra.mxu0 %v6501_v39  ;;  %4624 = vmatprep.subr.bf16.mxu1 %v5723_v30  ;;  %v6523_v39 = vand.u32 4294901760, %v6522_v1  ;;  %v4675_v1 = vpack.c.bf16 %v6532_v46, %v6530_v10  ;;  %v1090_v46 = vld [vmem:[%s6341_s3 + $0x10] sm:$0xff]  ;;  %v6540_v10 = vand.u32 4294901760, %v6539_v47 }
  0xbd   : > { %4459 = vmatprep.subr.bf16.mxu0 %v6461_v12  ;;  %1104 = vperm.xlu1 %4974, %v1090_v46   ;;  %v1953_v46 = vld [vmem:[%s6343_s5 + $0x18] sm:$0xff] }
  0xc3   : > { %4626 = vmatpush3.bf16.xpose.msra.mxu1 %v5723_v30  ;;  %v6504_v30 = vpack.c.bf16 %v5606_v2, %v5604_v54 }
  0xc4   : > { %4461 = vmatpush3.bf16.xpose.msra.mxu0 %v6502_v22  ;;  %4628 = vmatprep.subr.bf16.mxu1 %v5729_v23  ;;  %v6524_v22 = vld [vmem:[#allocation18_spill] sm:$0xff] }
  0xc5   : > { %4462 = vmatprep.subr.bf16.mxu0 %v6461_v12 }
  0xcb   : > { %4630 = vmatpush3.bf16.xpose.msra.mxu1 %v5729_v23  ;;  %v6505_v23 = vpack.c.bf16 %v5613_v37, %v5611_v42 }
  0xcc   : > { %4464 = vmatpush3.bf16.xpose.msra.mxu0 %v6503_v32  ;;  %4632 = vmatprep.subr.bf16.mxu1 %v5735_v62  ;;  %v6525_v32 = vand.u32 4294901760, %v6524_v22  ;;  %v6533_v22 = vand.u32 4294901760, %v5434_v50 }
  0xcd   : > { %4465 = vmatprep.subr.bf16.mxu0 %v6461_v12 }
  0xd3   : > { %4634 = vmatpush3.bf16.xpose.msra.mxu1 %v5735_v62  ;;  %v6507_v62 = vld [vmem:[#allocation16_spill] sm:$0xff] }
  0xd4   : > { %4467 = vmatpush3.bf16.xpose.msra.mxu0 %v6504_v30  ;;  %4636 = vmatprep.subr.bf16.mxu1 %v5744_v41  ;;  %v4671_v30 = vpack.c.bf16 %v6525_v32, %v6523_v39  ;;  %v6534_v39 = vand.u32 4294901760, %v6507_v62  ;;  %v1089_v32 = vld [vmem:[%s6341_s3 + $0x8] sm:$0xff] }
  0xd5   : > { %4468 = vmatprep.subr.bf16.mxu0 %v6461_v12 }
  0xdb   : > { %4638 = vmatpush3.bf16.xpose.msra.mxu1 %v5744_v41  ;;  %v6510_v41 = vand.u32 4294901760, %v5304_v57  ;;  %v6515_v57 = vld [vmem:[#allocation12_spill] sm:$0xff] }
  0xdc   : > { %4470 = vmatpush3.bf16.xpose.msra.mxu0 %v6505_v23  ;;  %4640 = vmatprep.subr.bf16.mxu1 %v6506_v53  ;;  %v6526_v23 = vld [vmem:[#allocation26_spill] sm:$0xff] }
  0xdd   : > { %4471 = vmatprep.subr.bf16.mxu0 %v6461_v12 }
  0xe2   : > { %4112 = vmatmul.mubr.f32.vlgmr.msra.gmra.mrb[0].mxu1 %v5434_v50  ;;  %v1088_v50 = vld [vmem:[%s6341_s3] sm:$0xff] }
  0xe3   : > { %4642 = vmatpush3.bf16.xpose.msra.mxu1 %v6506_v53  ;;  %3896 = vmatmul.mubr.f32.vlgmr.msra.gmra.mrb[0].mxu0 %v6507_v62 }
  0xe4   : > { %4473 = vmatpush3.bf16.xpose.msra.mxu0 %v6508_v55  ;;  %4644 = vmatprep.subr.bf16.mxu1 %v6509_v43 }
  0xe5   : > { %4474 = vmatprep.subr.bf16.mxu0 %v6461_v12  ;;  %4114 = vmatprep.mubr.f32.mxu1 %v5464_v6 }
  0xe6   : > { %4115 = vmatmul.mubr.f32.gmra.mrb[2].mxu1 %v5467_v11  ;;  %3930 = vmatprep.mubr.msk.f32.mxu0 %vm5072_vm0, %v6497_v18 }
  0xe7   : > { %4149 = vmatprep.mubr.f32.mxu1 %v6510_v41  ;;  %v6527_v41 = vand.u32 4294901760, %v5439_v49  ;;  %v6535_v49 = vand.u32 4294901760, %v5464_v6  ;;  %1094 = vperm.xlu0 %4973, %v1088_v50   ;;  %v6537_v6 = vand.u32 4294901760, %v5461_v17  ;;  %v1951_v17 = vld [vmem:[%s6343_s5 + $0x8] sm:$0xff]  ;;  %v1952_v50 = vld [vmem:[%s6343_s5 + $0x10] sm:$0xff] }
  0xe9   : > { %v4496_v59 = vpack.c.bf16 %v6528_v5, %v6527_v41  ;;  %v6542_v5 = vand.u32 4294901760, %v6541_v21  ;;  %v6543_v41 = vand.u32 4294901760, %v5498_v4  ;;  %v2609_v4 = vld [vmem:[%s6345_s7] sm:$0xff]  ;;  %v6552_v21 = vand.u32 4294901760, %v5547_v36 }
  0xea   : > { %v6556_v36 = vand.u32 4294901760, %v5591_v13  ;;  %v6562_v13 = vand.u32 4294901760, %v5698_v20 }
  0xeb   : > { %4646 = vmatpush3.bf16.xpose.msra.mxu1 %v6509_v43  ;;  %v4679_v62 = vpack.c.bf16 %v6542_v5, %v6540_v10  ;;  %1099 = vperm.xlu0 %4973, %v1089_v32   ;;  %v2611_v10 = vld [vmem:[%s6345_s7 + $0x10] sm:$0xff]  ;;  %v6554_v32 = vand.u32 4294901760, %v5665_v0  ;;  %v6558_v0 = vand.u32 4294901760, %v5681_v27  ;;  %v6564_v27 = vand.u32 4294901760, %v5613_v37 }
  0xec   : > { %4476 = vmatpush3.bf16.xpose.msra.mxu0 %v6511_v60  ;;  %4648 = vmatprep.subr.bf16.mxu1 %v6512_v51 }
  0xed   : > { %4477 = vmatprep.subr.bf16.mxu0 %v6461_v12 }
  0xf3   : > { %4650 = vmatpush3.bf16.xpose.msra.mxu1 %v6512_v51 }
  0xf4   : > { %4479 = vmatpush3.bf16.xpose.msra.mxu0 %v6513_v26  ;;  %4652 = vmatprep.subr.bf16.mxu1 %v6514_v63 }
  0xf5   : > { %4480 = vmatprep.subr.bf16.mxu0 %v6461_v12 }
  0xfb   : > { %4654 = vmatpush3.bf16.xpose.msra.mxu1 %v6514_v63 }
  0xfc   : > { %4482 = vmatpush3.bf16.xpose.msra.mxu0 %v6515_v57  ;;  %4656 = vmatprep.subr.bf16.mxu1 %v6516_v15 }
  0xfd   : > { %4483 = vmatprep.subr.bf16.mxu0 %v6461_v12 }
 0x103   : > { %4658 = vmatpush3.bf16.xpose.msra.mxu1 %v6516_v15 }
 0x104   : > { %4485 = vmatpush3.bf16.xpose.msra.mxu0 %v6517_v44  ;;  %4660 = vmatprep.subr.bf16.mxu1 %v6518_v29 }
 0x105   : > { %4486 = vmatprep.subr.bf16.mxu0 %v6461_v12 }
 0x10b   : > { %4662 = vmatpush3.bf16.xpose.msra.mxu1 %v6518_v29 }
 0x10c   : > { %4488 = vmatpush3.bf16.xpose.msra.mxu0 %v6519_v25  ;;  %4664 = vmatprep.subr.bf16.mxu1 %v6520_v3 }
 0x10d   : > { %4489 = vmatprep.subr.bf16.mxu0 %v6461_v12 }
 0x113   : > { %4666 = vmatpush3.bf16.xpose.msra.mxu1 %v6520_v3 }
 0x114   : > { %4491 = vmatpush3.bf16.xpose.msra.mxu0 %v6521_v40  ;;  %4668 = vmatprep.subr.bf16.mxu1 %v5563_v31 }
 0x115   : > { %4492 = vmatprep.subr.bf16.mxu0 %v6461_v12 }
 0x11b   : > { %4670 = vmatpush3.bf16.xpose.msra.mxu1 %v5563_v31 }
 0x11c   : > { %4494 = vmatpush3.bf16.xpose.msra.mxu0 %v6526_v23  ;;  %4672 = vmatprep.subr.bf16.mxu1 %v4671_v30 }
 0x11d   : > { %4495 = vmatprep.subr.bf16.mxu0 %v6461_v12 }
 0x122   : > { %4150 = vmatmul.mubr.f32.vlgmr.msra.gmra.mrb[0].mxu1 %v6533_v22 }
 0x123   : > { %4674 = vmatpush3.bf16.xpose.msra.mxu1 %v4671_v30  ;;  %3931 = vmatmul.mubr.f32.vlgmr.msra.gmra.mrb[0].mxu0 %v6534_v39  ;;  %v1091_v30 = vld [vmem:[%s6341_s3 + $0x18] sm:$0xff]  ;;  %v6545_v39 = vand.u32 4294901760, %v5639_v14  ;;  %v6547_v14 = vand.u32 4294901760, %v5519_v45 }
 0x124   : > { %4497 = vmatpush3.bf16.xpose.msra.mxu0 %v4496_v59  ;;  %4676 = vmatprep.subr.bf16.mxu1 %v4675_v1  ;;  %v6538_v59 = vand.u32 4294901760, %v5490_v8  ;;  %v1950_v8 = vld [vmem:[%s6343_s5] sm:$0xff]  ;;  %v2612_v45 = vld [vmem:[%s6345_s7 + $0x18] sm:$0xff] }
 0x125   : > { %4498 = vmatprep.subr.bf16.mxu0 %v6461_v12  ;;  %4152 = vmatprep.mubr.f32.mxu1 %v6535_v49  ;;  %v6546_v49 = vand.u32 4294901760, %v5644_v58  ;;  %v6548_v58 = vand.u32 4294901760, %v5524_v33  ;;  %v369_v33 = vld [vmem:[%s352_s19] sm:$0xff] }
 0x126   : > { %4153 = vmatmul.mubr.f32.gmra.mrb[2].mxu1 %v6536_v52  ;;  %3965 = vmatprep.mubr.msk.f32.mxu0 %vm5072_vm0, %v6497_v18  ;;  %v4499_v11 = vpack.c.bf16 %v6538_v59, %v6537_v6  ;;  %v6549_v59 = vand.u32 4294901760, %v5649_v61  ;;  %v370_v61 = vld [vmem:[%s352_s19 + $0x8] sm:$0xff] }
 0x127   : > { %4187 = vmatprep.mubr.f32.mxu1 %v5291_v48  ;;  %1109 = vperm.xlu1 %4974, %v1091_v30   ;;  %v4683_v52 = vpack.c.bf16 %v6546_v49, %v6545_v39  ;;  %v4505_v6 = vpack.c.bf16 %v6548_v58, %v6547_v14  ;;  %v6560_v39 = vand.u32 4294901760, %v5606_v2  ;;  %v6565_v2 = vmov 1.0  }
 0x128   : > { %1956 = vperm.xlu0 %4973, %v1950_v8   ;;  %v371_v8 = vld [vmem:[%s352_s19 + $0x10] sm:$0xff] }
 0x12b   : > { %4678 = vmatpush3.bf16.xpose.msra.mxu1 %v4675_v1  ;;  %v6544_v1 = vand.u32 4294901760, %v5503_v19  ;;  %1961 = vperm.xlu1 %4974, %v1951_v17   ;;  %v2610_v19 = vld [vmem:[%s6345_s7 + $0x8] sm:$0xff]  ;;  %v372_v17 = vld [vmem:[%s352_s19 + $0x18] sm:$0xff] }
 0x12c   : > { %4500 = vmatpush3.bf16.xpose.msra.mxu0 %v4499_v11  ;;  %4680 = vmatprep.subr.bf16.mxu1 %v4679_v62  ;;  %v6550_v11 = vand.u32 4294901760, %v5654_v28  ;;  %v6551_v28 = vand.u32 4294901760, %v5542_v35  ;;  %v6555_v35 = vand.u32 4294901760, %v5572_v16  ;;  %v6561_v16 = vand.u32 4294901760, %v5693_v24 }
 0x12d   : > { %4501 = vmatprep.subr.bf16.mxu0 %v6461_v12  ;;  %v4502_v22 = vpack.c.bf16 %v6544_v1, %v6543_v41  ;;  %1966 = vperm.xlu0 %4973, %v1952_v50  }
 0x12e   : > { %v4687_v47 = vpack.c.bf16 %v6550_v11, %v6549_v59  ;;  %v4508_v5 = vpack.c.bf16 %v6552_v21, %v6551_v28  ;;  %v4511_v41 = vpack.c.bf16 %v6556_v36, %v6555_v35 }
 0x12f   : > { %1971 = vperm.xlu1 %4974, %v1953_v46  }
 0x131   : > { %2615 = vperm.xlu0 %4973, %v2609_v4  }
 0x133   : > { %4682 = vmatpush3.bf16.xpose.msra.mxu1 %v4679_v62  ;;  %2620 = vperm.xlu1 %4974, %v2610_v19   ;;  %v6553_v62 = vand.u32 4294901760, %v5660_v7  ;;  %v6557_v7 = vand.u32 4294901760, %v5676_v34  ;;  %v6563_v34 = vand.u32 4294901760, %v5611_v42  ;;  %v1948_v42 = vld [vmem:[%s6342_s4 + $0x10] sm:$0xff] }
 0x134   : > { %4503 = vmatpush3.bf16.xpose.msra.mxu0 %v4502_v22  ;;  %4684 = vmatprep.subr.bf16.mxu1 %v4683_v52  ;;  %v6559_v22 = vand.u32 4294901760, %v5604_v54 }
 0x135   : > { %4504 = vmatprep.subr.bf16.mxu0 %v6461_v12  ;;  %2625 = vperm.xlu0 %4973, %v2611_v10   ;;  %v4691_v30 = vpack.c.bf16 %v6554_v32, %v6553_v62  ;;  %v4695_v1 = vpack.c.bf16 %v6558_v0, %v6557_v7  ;;  %v4517_v50 = vpack.c.bf16 %v6564_v27, %v6563_v34 }
 0x136   : > { %v4514_v49 = vpack.c.bf16 %v6560_v39, %v6559_v22 }
 0x137   : > { %2630 = vperm.xlu1 %4974, %v2612_v45  }
 0x139   : > { %3265 = vperm.xlu0 %4973, %v369_v33  }
 0x13b   : > { %4686 = vmatpush3.bf16.xpose.msra.mxu1 %v4683_v52  ;;  %3270 = vperm.xlu1 %4974, %v370_v61   ;;  %v4699_v52 = vpack.c.bf16 %v6562_v13, %v6561_v16 }
 0x13c   : > { %4506 = vmatpush3.bf16.xpose.msra.mxu0 %v4505_v6  ;;  %4688 = vmatprep.subr.bf16.mxu1 %v4687_v47 }
 0x13d   : > { %4507 = vmatprep.subr.bf16.mxu0 %v6461_v12  ;;  %3275 = vperm.xlu0 %4973, %v371_v8  }
 0x13f   : > { %3280 = vperm.xlu1 %4974, %v372_v17  }
 0x143   : > { %4690 = vmatpush3.bf16.xpose.msra.mxu1 %v4687_v47 }
 0x144   : > { %4509 = vmatpush3.bf16.xpose.msra.mxu0 %v4508_v5  ;;  %4692 = vmatprep.subr.bf16.mxu1 %v4691_v30 }
 0x145   : > { %4510 = vmatprep.subr.bf16.mxu0 %v6461_v12 }
 0x14b   : > { %4694 = vmatpush3.bf16.xpose.msra.mxu1 %v4691_v30 }
 0x14c   : > { %4512 = vmatpush3.bf16.xpose.msra.mxu0 %v4511_v41  ;;  %4696 = vmatprep.subr.bf16.mxu1 %v4695_v1 }
 0x14d   : > { %4513 = vmatprep.subr.bf16.mxu0 %v6461_v12 }
 0x153   : > { %4698 = vmatpush3.bf16.xpose.msra.mxu1 %v4695_v1 }
 0x154   : > { %4515 = vmatpush3.bf16.xpose.msra.mxu0 %v4514_v49  ;;  %4700 = vmatprep.subr.bf16.mxu1 %v4699_v52 }
 0x155   : > { %4516 = vmatprep.subr.bf16.mxu0 %v6461_v12 }
 0x15b   : > { %4702 = vmatpush3.bf16.xpose.msra.mxu1 %v4699_v52 }
 0x15c   : > { %4518 = vmatpush3.bf16.xpose.msra.mxu0 %v4517_v50  ;;  %4704 = vmatprep.subr.bf16.mxu1 %v6506_v53 }
 0x15d   : > { %4519 = vmatprep.subr.bf16.mxu0 %v6461_v12 }
 0x162   : > { %4188 = vmatmul.mubr.f32.vlgmr.msra.gmra.mrb[0].mxu1 %v5416_v56 }
 0x163   : > { %4706 = vmatpush3.bf16.xpose.msra.mxu1 %v6506_v53  ;;  %3966 = vmatmul.mubr.msk.f32.vlgmr.msra.gmra.mrb[0].mxu0 %vm389_vm1, %v6565_v2  ;;  %v1949_v53 = vld [vmem:[%s6342_s4 + $0x18] sm:$0xff] }
 0x164   : > { %4521 = vmatpush3.bf16.xpose.msra.mxu0 %v6508_v55  ;;  %4708 = vmatprep.subr.bf16.mxu1 %v6509_v43 }
 0x165   : > { %4522 = vmatprep.subr.bf16.mxu0 %v6461_v12  ;;  %4190 = vmatprep.mubr.f32.mxu1 %v5422_v9 }
 0x166   : > { %4191 = vmatmul.mubr.f32.gmra.mrb[2].mxu1 %v5424_v38  ;;  %4000 = vmatprep.mubr.msk.f32.mxu0 %vm5072_vm0, %v6497_v18  ;;  %v1095_v24 = vpop.permute.xlu0 %1094  ;;  %v1982_v18 = vsel %vm1974_vm2, %v1948_v42, 0 }
 0x167   : > { %4225 = vmatprep.mubr.f32.mxu1 %v5291_v48  ;;  %v1946_v48 = vld [vmem:[%s6342_s4] sm:$0xff] }
 0x16b   : > { %4710 = vmatpush3.bf16.xpose.msra.mxu1 %v6509_v43  ;;  %v1105_v43 = vpop.permute.xlu1 %1104 }
 0x16c   : > { %4524 = vmatpush3.bf16.xpose.msra.mxu0 %v6511_v60  ;;  %4712 = vmatprep.subr.bf16.mxu1 %v6512_v51  ;;  %v6139_v60 = vand.u32 4294901760, %v1982_v18 }
 0x16d   : > { %4525 = vmatprep.subr.bf16.mxu0 %v6461_v12 }
 0x16e   : > { %v6150_v46 = vsub.f32 %v1982_v18, %v6139_v60 }
 0x170   : > { %v2078_v28 = vand.u32 4294901760, %v6150_v46 }
 0x172   : > { %v2079_v1 = vsub.f32 %v6150_v46, %v2078_v28 }
 0x173   : > { %4714 = vmatpush3.bf16.xpose.msra.mxu1 %v6512_v51  ;;  %v1985_v51 = vsel %vm1974_vm2, %v1949_v53, 0 }
 0x174   : > { %4527 = vmatpush3.bf16.xpose.msra.mxu0 %v6513_v26  ;;  %4716 = vmatprep.subr.bf16.mxu1 %v6514_v63  ;;  %v1100_v26 = vpop.permute.xlu0 %1099 }
 0x175   : > { %4528 = vmatprep.subr.bf16.mxu0 %v6461_v12 }
 0x17b   : > { %4718 = vmatpush3.bf16.xpose.msra.mxu1 %v6514_v63 }
 0x17c   : > { %4530 = vmatpush3.bf16.xpose.msra.mxu0 %v6515_v57  ;;  %4720 = vmatprep.subr.bf16.mxu1 %v6516_v15 }
 0x17d   : > { %4531 = vmatprep.subr.bf16.mxu0 %v6461_v12 }
 0x183   : > { %4722 = vmatpush3.bf16.xpose.msra.mxu1 %v6516_v15 }
 0x184   : > { %4533 = vmatpush3.bf16.xpose.msra.mxu0 %v6517_v44  ;;  %4724 = vmatprep.subr.bf16.mxu1 %v6518_v29 }
 0x185   : > { %4534 = vmatprep.subr.bf16.mxu0 %v6461_v12 }
 0x18b   : > { %4726 = vmatpush3.bf16.xpose.msra.mxu1 %v6518_v29 }
 0x18c   : > { %4536 = vmatpush3.bf16.xpose.msra.mxu0 %v6519_v25  ;;  %4728 = vmatprep.subr.bf16.mxu1 %v6520_v3 }
 0x18d   : > { %4537 = vmatprep.subr.bf16.mxu0 %v6461_v12 }
 0x193   : > { %4730 = vmatpush3.bf16.xpose.msra.mxu1 %v6520_v3 }
 0x194   : > { %4539 = vmatpush3.bf16.xpose.msra.mxu0 %v6521_v40  ;;  %4732 = vmatprep.subr.bf16.mxu1 %v5563_v31  ;;  %v6147_v40 = vand.u32 4294901760, %v1985_v51 }
 0x195   : > { %4540 = vmatprep.subr.bf16.mxu0 %v6461_v12  ;;  %v1976_v12 = vsel %vm1974_vm2, %v1946_v48, 0 }
 0x196   : > { %v6117_v37 = vand.u32 4294901760, %v1976_v12  ;;  %v6154_v45 = vsub.f32 %v1985_v51, %v6147_v40 }
 0x198   : > { %v2088_v36 = vand.u32 4294901760, %v6154_v45 }
 0x19b   : > { %4734 = vmatpush3.bf16.xpose.msra.mxu1 %v5563_v31  ;;  %v6120_v31 = vsub.f32 %v1976_v12, %v6117_v37  ;;  %v2080_v12 = vand.u32 4294901760, %v2079_v1 }
 0x19c   : > { %4542 = vmatpush3.bf16.xpose.msra.mxu0 %v6526_v23 }
 0x1a2   : > { %4226 = vmatmul.mubr.f32.vlgmr.msra.gmra.mrb[0].mxu1 %v5416_v56  ;;  %v2058_v56 = vand.u32 4294901760, %v6120_v31 }
 0x1a3   : > { %4001 = vmatmul.mubr.msk.f32.vlgmr.msra.gmra.mrb[0].mxu0 %vm389_vm1, %v6565_v2  ;;  %4228 = vmatprep.mubr.f32.mxu1 %v5422_v9  ;;  %v2089_v2 = vsub.f32 %v6154_v45, %v2088_v36 }
 0x1a4   : > { %v2059_v9 = vsub.f32 %v6120_v31, %v2058_v56 }
 0x1a6   : > { %4229 = vmatmul.mubr.f32.gmra.mrb[2].mxu1 %v5424_v38  ;;  %v2060_v54 = vand.u32 4294901760, %v2059_v9  ;;  %v1947_v38 = vld [vmem:[%s6342_s4 + $0x8] sm:$0xff]  ;;  %v1110_v4 = vpop.permute.xlu1 %1109 }
 0x1a7   : > { %v1979_v20 = vsel %vm1974_vm2, %v1947_v38, 0 }
 0x1a8   : > { %4239 = vmatprep.mubr.f32.mxu0 %v2060_v54  ;;  %v6137_v55 = vand.u32 4294901760, %v1979_v20 }
 0x1aa   : > { %v6145_v29 = vsub.f32 %v1979_v20, %v6137_v55  ;;  %v2090_v20 = vand.u32 4294901760, %v2089_v2 }
 0x1ac   : > { %v2068_v11 = vand.u32 4294901760, %v6145_v29 }
 0x1ae   : > { %v2069_v8 = vsub.f32 %v6145_v29, %v2068_v11 }
 0x1b0   : > { %v2070_v52 = vand.u32 4294901760, %v2069_v8 }
 0x275   : > { %v4227_v63 = vpop.f32.mrb[0].mxu1 }
 0x276   : > { %v4831_v57 = vadd.f32 %v4227_v63, %v1100_v26  ;;  %v6142_v15 = vpop.f32.mrb[0].mxu0  ;;  %v1920_v44 = vpop.f32.mrb[1].mxu1  ;;  %v2607_v63 = vld [vmem:[%s6344_s6 + $0x10] sm:$0xff] }
 0x277   : > { %v4832_v25 = vadd.f32 %v1920_v44, %v1095_v24  ;;  %v4002_v3 = vpop.f32.mrb[1].mxu0  ;;  %v2640_v44 = vsel %vm1974_vm2, %v2607_v63, 0 }
 0x278   : > { %v1943_v23 = vmax.f32 %v4831_v57, 0.0  ;;  %v1962_v3 = vpop.permute.xlu1 %1961 }
 0x279   : > { %v1942_v19 = vmax.f32 %v4832_v25, 0.0  ;;  %v4230_v14 = vpop.f32.mrb[2].mxu1 }
 0x27a   : > { %v1991_v58 = vand.u32 4294901760, %v1943_v23  ;;  %v4833_v6 = vadd.f32 %v4230_v14, %v1110_v4  ;;  %v1932_v59 = vpop.f32.mrb[3].mxu1 }
 0x27b   : > { %v1988_v47 = vand.u32 4294901760, %v1942_v19  ;;  %v4834_v10 = vadd.f32 %v1932_v59, %v1105_v43 }
 0x27c   : > { %v2105_v33 = vsub.f32 %v1943_v23, %v1991_v58  ;;  %v1945_v61 = vmax.f32 %v4833_v6, 0.0  ;;  %v6221_v23 = vand.u32 4294901760, %v2640_v44 }
 0x27d   : > { %v6157_v21 = vpack.c.bf16 %v1991_v58, %v1988_v47  ;;  %v2098_v5 = vsub.f32 %v1942_v19, %v1988_v47  ;;  %v1944_v62 = vmax.f32 %v4834_v10, 0.0  ;;  %v1972_v10 = vpop.permute.xlu1 %1971 }
 0x27e   : > { %v2106_v32 = vand.u32 4294901760, %v2105_v33  ;;  %v1997_v30 = vand.u32 4294901760, %v1945_v61  ;;  %v6230_v47 = vsub.f32 %v2640_v44, %v6221_v23 }
 0x27f   : > { %v2099_v17 = vand.u32 4294901760, %v2098_v5  ;;  %v1994_v35 = vand.u32 4294901760, %v1944_v62  ;;  %4736 = vmatprep.subr.bf16.mxu0 %v6157_v21  ;;  %v4751_v41 = vpack.c.bf16 %v2105_v33, %v2098_v5 }
 0x280   : > { %v2119_v7 = vsub.f32 %v1945_v61, %v1997_v30  ;;  %4738 = vmatpush3.bf16.msra.mxu0 %v6157_v21  ;;  %v2107_v0 = vsub.f32 %v2105_v33, %v2106_v32 }
 0x281   : > { %v4739_v22 = vpack.c.bf16 %v1997_v30, %v1994_v35  ;;  %v2112_v39 = vsub.f32 %v1944_v62, %v1994_v35  ;;  %v2100_v49 = vsub.f32 %v2098_v5, %v2099_v17  ;;  %v4767_v16 = vpack.c.bf16 %v2106_v32, %v2099_v17 }
 0x282   : > { %v2120_v13 = vand.u32 4294901760, %v2119_v7  ;;  %v2108_v34 = vand.u32 4294901760, %v2107_v0 }
 0x283   : > { %v2113_v27 = vand.u32 4294901760, %v2112_v39  ;;  %4740 = vmatprep.subr.bf16.mxu0 %v4739_v22  ;;  %v2101_v50 = vand.u32 4294901760, %v2100_v49  ;;  %v4755_v48 = vpack.c.bf16 %v2119_v7, %v2112_v39 }
 0x284   : > { %4742 = vmatpush3.bf16.msra.mxu0 %v4739_v22  ;;  %v2121_v9 = vsub.f32 %v2119_v7, %v2120_v13 }
 0x285   : > { %v4743_v54 = vpack.c.bf16 %v2108_v34, %v2101_v50  ;;  %v2114_v38 = vsub.f32 %v2112_v39, %v2113_v27  ;;  %v4771_v42 = vpack.c.bf16 %v2120_v13, %v2113_v27 }
 0x286   : > { %v2122_v24 = vand.u32 4294901760, %v2121_v9 }
 0x287   : > { %4240 = vmatmul.mubr.f32.vlgmr.msra.gmra.mrb[2].mxu0 %v2070_v52  ;;  %4744 = vmatprep.subr.bf16.mxu0 %v4743_v54  ;;  %v2115_v18 = vand.u32 4294901760, %v2114_v38 }
 0x288   : > { %4746 = vmatpush3.bf16.msra.mxu0 %v4743_v54  ;;  %4242 = vmatprep.mubr.f32.mxu0 %v2080_v12 }
 0x289   : > { %v4747_v53 = vpack.c.bf16 %v2122_v24, %v2115_v18 }
 0x28b   : > { %4243 = vmatmul.mubr.f32.gmra.mrb[4].mxu0 %v2090_v20  ;;  %4748 = vmatprep.subr.bf16.mxu0 %v4747_v53 }
 0x28c   : > { %4750 = vmatpush3.bf16.msra.mxu0 %v4747_v53  ;;  %4253 = vmatprep.mubr.f32.mxu0 %v6117_v37 }
 0x28d   : > { %4752 = vmatprep.subr.bf16.mxu0 %v4751_v41 }
 0x28f   : > { %4254 = vmatmul.mubr.f32.vlgmr.msra.gmra.mrb[2].mxu0 %v6137_v55 }
 0x290   : > { %4754 = vmatpush3.bf16.msra.mxu0 %v4751_v41  ;;  %4256 = vmatprep.mubr.f32.mxu0 %v6139_v60 }
 0x291   : > { %4756 = vmatprep.subr.bf16.mxu0 %v4755_v48 }
 0x293   : > { %4257 = vmatmul.mubr.f32.gmra.mrb[4].mxu0 %v6147_v40 }
 0x294   : > { %4758 = vmatpush3.bf16.msra.mxu0 %v4755_v48  ;;  %4267 = vmatprep.mubr.f32.mxu0 %v6120_v31  ;;  %v2605_v31 = vld [vmem:[%s6344_s6] sm:$0xff] }
 0x295   : > { %4760 = vmatprep.subr.bf16.mxu0 %v6157_v21 }
 0x297   : > { %4268 = vmatmul.mubr.f32.vlgmr.msra.gmra.mrb[2].mxu0 %v6145_v29  ;;  %v2608_v29 = vld [vmem:[%s6344_s6 + $0x18] sm:$0xff] }
 0x298   : > { %4762 = vmatpush3.bf16.msra.mxu0 %v6157_v21  ;;  %4270 = vmatprep.mubr.f32.mxu0 %v6150_v46  ;;  %v2643_v46 = vsel %vm1974_vm2, %v2608_v29, 0 }
 0x299   : > { %4764 = vmatprep.subr.bf16.mxu0 %v4739_v22  ;;  %v6227_v59 = vand.u32 4294901760, %v2643_v46 }
 0x29b   : > { %4271 = vmatmul.mubr.f32.gmra.mrb[4].mxu0 %v6154_v45  ;;  %v6234_v8 = vsub.f32 %v2643_v46, %v6227_v59 }
 0x29c   : > { %4766 = vmatpush3.bf16.msra.mxu0 %v4739_v22  ;;  %4281 = vmatprep.mubr.f32.mxu0 %v2058_v56  ;;  %v2634_v56 = vsel %vm1974_vm2, %v2605_v31, 0 }
 0x29d   : > { %4768 = vmatprep.subr.bf16.mxu0 %v4767_v16  ;;  %v6199_v43 = vand.u32 4294901760, %v2634_v56  ;;  %v2746_v13 = vand.u32 4294901760, %v6234_v8 }
 0x29f   : > { %4282 = vmatmul.mubr.f32.vlgmr.msra.gmra.mrb[2].mxu0 %v2068_v11  ;;  %v6202_v51 = vsub.f32 %v2634_v56, %v6199_v43  ;;  %v2747_v18 = vsub.f32 %v6234_v8, %v2746_v13 }
 0x2a0   : > { %4770 = vmatpush3.bf16.msra.mxu0 %v4767_v16  ;;  %4284 = vmatprep.mubr.f32.mxu0 %v2078_v28 }
 0x2a1   : > { %4772 = vmatprep.subr.bf16.mxu0 %v4771_v42  ;;  %v2716_v26 = vand.u32 4294901760, %v6202_v51 }
 0x2a3   : > { %4285 = vmatmul.mubr.f32.gmra.mrb[4].mxu0 %v2088_v36  ;;  %v2736_v36 = vand.u32 4294901760, %v6230_v47 }
 0x2a4   : > { %4774 = vmatpush3.bf16.msra.mxu0 %v4771_v42  ;;  %4295 = vmatprep.mubr.f32.mxu0 %v6117_v37 }
 0x2a5   : > { %4776 = vmatprep.subr.bf16.mxu0 %v6157_v21  ;;  %v2737_v50 = vsub.f32 %v6230_v47, %v2736_v36 }
 0x2a7   : > { %4296 = vmatmul.mubr.f32.vlgmr.msra.gmra.mrb[2].mxu0 %v6137_v55  ;;  %v2738_v31 = vand.u32 4294901760, %v2737_v50 }
 0x2a8   : > { %4778 = vmatpush3.bf16.msra.mxu0 %v6157_v21  ;;  %4298 = vmatprep.mubr.f32.mxu0 %v6139_v60 }
 0x2a9   : > { %4780 = vmatprep.subr.bf16.mxu0 %v4739_v22 }
 0x2ab   : > { %4299 = vmatmul.mubr.f32.gmra.mrb[4].mxu0 %v6147_v40 }
 0x2ac   : > { %4782 = vmatpush3.bf16.msra.mxu0 %v4739_v22  ;;  %4309 = vmatprep.mubr.f32.mxu0 %v6117_v37  ;;  %v2717_v37 = vsub.f32 %v6202_v51, %v2716_v26 }
 0x2af   : > { %4310 = vmatmul.mubr.f32.vlgmr.msra.gmra.mrb[2].mxu0 %v6137_v55  ;;  %v2718_v55 = vand.u32 4294901760, %v2717_v37 }
 0x2b0   : > { %4312 = vmatprep.mubr.f32.mxu0 %v6139_v60  ;;  %v2606_v60 = vld [vmem:[%s6344_s6 + $0x8] sm:$0xff] }
 0x2b1   : > { %4323 = vmatprep.mubr.f32.mxu1 %v2718_v55  ;;  %v2637_v57 = vsel %vm1974_vm2, %v2606_v60, 0 }
 0x2b2   : > { %v6219_v25 = vand.u32 4294901760, %v2637_v57 }
 0x2b3   : > { %4313 = vmatmul.mubr.f32.gmra.mrb[4].mxu0 %v6147_v40  ;;  %v1957_v40 = vpop.permute.xlu0 %1956 }
 0x2b4   : > { %v6225_v58 = vsub.f32 %v2637_v57, %v6219_v25  ;;  %v2748_v57 = vand.u32 4294901760, %v2747_v18 }
 0x2b6   : > { %v2726_v62 = vand.u32 4294901760, %v6225_v58 }
 0x2b7   : > { %v1967_v61 = vpop.permute.xlu0 %1966 }
 0x2b8   : > { %v2727_v39 = vsub.f32 %v6225_v58, %v2726_v62 }
 0x2ba   : > { %v2728_v38 = vand.u32 4294901760, %v2727_v39 }
 0x382   : > { %v4311_v4 = vpop.f32.mrb[2].mxu0 }
 0x383   : > { %v4835_v19 = vadd.f32 %v4311_v4, %v1962_v3  ;;  %v2579_v14 = vpop.f32.mrb[3].mxu0 }
 0x384   : > { %v4836_v6 = vadd.f32 %v2579_v14, %v1957_v40 }
 0x385   : > { %v2602_v11 = vmax.f32 %v4835_v19, 0.0 }
 0x386   : > { %v2601_v45 = vmax.f32 %v4836_v6, 0.0  ;;  %v4314_v33 = vpop.f32.mrb[4].mxu0 }
 0x387   : > { %v2649_v28 = vand.u32 4294901760, %v2602_v11  ;;  %v4837_v21 = vadd.f32 %v4314_v33, %v1972_v10  ;;  %v2591_v5 = vpop.f32.mrb[5].mxu0 }
 0x388   : > { %v2646_v32 = vand.u32 4294901760, %v2601_v45  ;;  %v4838_v30 = vadd.f32 %v2591_v5, %v1967_v61 }
 0x389   : > { %v2763_v17 = vsub.f32 %v2602_v11, %v2649_v28  ;;  %v2604_v35 = vmax.f32 %v4837_v21, 0.0 }
 0x38a   : > { %v6237_v41 = vpack.c.bf16 %v2649_v28, %v2646_v32  ;;  %v2756_v7 = vsub.f32 %v2601_v45, %v2646_v32  ;;  %v2603_v0 = vmax.f32 %v4838_v30, 0.0 }
 0x38b   : > { %v2764_v1 = vand.u32 4294901760, %v2763_v17  ;;  %v2655_v22 = vand.u32 4294901760, %v2604_v35 }
 0x38c   : > { %v2757_v49 = vand.u32 4294901760, %v2756_v7  ;;  %v2652_v16 = vand.u32 4294901760, %v2603_v0  ;;  %4784 = vmatprep.subr.bf16.mxu1 %v6237_v41  ;;  %v4799_v52 = vpack.c.bf16 %v2763_v17, %v2756_v7 }
 0x38d   : > { %v2777_v34 = vsub.f32 %v2604_v35, %v2655_v22  ;;  %4786 = vmatpush3.bf16.msra.mxu1 %v6237_v41  ;;  %v2765_v27 = vsub.f32 %v2763_v17, %v2764_v1 }
 0x38e   : > { %v4787_v2 = vpack.c.bf16 %v2655_v22, %v2652_v16  ;;  %v2770_v48 = vsub.f32 %v2603_v0, %v2652_v16  ;;  %v2758_v12 = vsub.f32 %v2756_v7, %v2757_v49  ;;  %v4815_v9 = vpack.c.bf16 %v2764_v1, %v2757_v49 }
 0x38f   : > { %v2778_v54 = vand.u32 4294901760, %v2777_v34  ;;  %v2766_v42 = vand.u32 4294901760, %v2765_v27 }
 0x390   : > { %v2771_v24 = vand.u32 4294901760, %v2770_v48  ;;  %4788 = vmatprep.subr.bf16.mxu1 %v4787_v2  ;;  %v2759_v20 = vand.u32 4294901760, %v2758_v12  ;;  %v4803_v53 = vpack.c.bf16 %v2777_v34, %v2770_v48 }
 0x391   : > { %4790 = vmatpush3.bf16.msra.mxu1 %v4787_v2  ;;  %v2779_v56 = vsub.f32 %v2777_v34, %v2778_v54 }
 0x392   : > { %v4791_v37 = vpack.c.bf16 %v2766_v42, %v2759_v20  ;;  %v2772_v55 = vsub.f32 %v2770_v48, %v2771_v24  ;;  %v4819_v60 = vpack.c.bf16 %v2778_v54, %v2771_v24 }
 0x393   : > { %v2780_v63 = vand.u32 4294901760, %v2779_v56 }
 0x394   : > { %4324 = vmatmul.mubr.f32.vlgmr.msra.gmra.mrb[4].mxu1 %v2728_v38  ;;  %4792 = vmatprep.subr.bf16.mxu1 %v4791_v37  ;;  %v2773_v44 = vand.u32 4294901760, %v2772_v55 }
 0x395   : > { %4794 = vmatpush3.bf16.msra.mxu1 %v4791_v37  ;;  %4326 = vmatprep.mubr.f32.mxu1 %v2738_v31 }
 0x396   : > { %v4795_v29 = vpack.c.bf16 %v2780_v63, %v2773_v44 }
 0x398   : > { %4327 = vmatmul.mubr.f32.gmra.mrb[6].mxu1 %v2748_v57  ;;  %4796 = vmatprep.subr.bf16.mxu1 %v4795_v29 }
 0x399   : > { %4798 = vmatpush3.bf16.msra.mxu1 %v4795_v29  ;;  %4337 = vmatprep.mubr.f32.mxu1 %v6199_v43 }
 0x39a   : > { %4800 = vmatprep.subr.bf16.mxu1 %v4799_v52 }
 0x39c   : > { %4338 = vmatmul.mubr.f32.vlgmr.msra.gmra.mrb[4].mxu1 %v6219_v25 }
 0x39d   : > { %4802 = vmatpush3.bf16.msra.mxu1 %v4799_v52  ;;  %4340 = vmatprep.mubr.f32.mxu1 %v6221_v23 }
 0x39e   : > { %4804 = vmatprep.subr.bf16.mxu1 %v4803_v53 }
 0x3a0   : > { %4341 = vmatmul.mubr.f32.gmra.mrb[6].mxu1 %v6227_v59 }
 0x3a1   : > { %4806 = vmatpush3.bf16.msra.mxu1 %v4803_v53  ;;  %4351 = vmatprep.mubr.f32.mxu1 %v6202_v51  ;;  %v2621_v51 = vpop.permute.xlu1 %2620 }
 0x3a2   : > { %4808 = vmatprep.subr.bf16.mxu1 %v6237_v41 }
 0x3a4   : > { %4352 = vmatmul.mubr.f32.vlgmr.msra.gmra.mrb[4].mxu1 %v6225_v58 }
 0x3a5   : > { %4810 = vmatpush3.bf16.msra.mxu1 %v6237_v41  ;;  %4354 = vmatprep.mubr.f32.mxu1 %v6230_v47  ;;  %v2631_v14 = vpop.permute.xlu1 %2630 }
 0x3a6   : > { %4812 = vmatprep.subr.bf16.mxu1 %v4787_v2 }
 0x3a8   : > { %4355 = vmatmul.mubr.f32.gmra.mrb[6].mxu1 %v6234_v8 }
 0x3a9   : > { %4814 = vmatpush3.bf16.msra.mxu1 %v4787_v2  ;;  %4365 = vmatprep.mubr.f32.mxu1 %v2716_v26  ;;  %v2616_v26 = vpop.permute.xlu0 %2615  ;;  %v3271_v7 = vpop.permute.xlu1 %3270 }
 0x3aa   : > { %4816 = vmatprep.subr.bf16.mxu1 %v4815_v9 }
 0x3ac   : > { %4366 = vmatmul.mubr.f32.vlgmr.msra.gmra.mrb[4].mxu1 %v2726_v62 }
 0x3ad   : > { %4818 = vmatpush3.bf16.msra.mxu1 %v4815_v9  ;;  %4368 = vmatprep.mubr.f32.mxu1 %v2736_v36  ;;  %v2626_v11 = vpop.permute.xlu0 %2625  ;;  %v3281_v12 = vpop.permute.xlu1 %3280 }
 0x3ae   : > { %4820 = vmatprep.subr.bf16.mxu1 %v4819_v60 }
 0x3b0   : > { %4369 = vmatmul.mubr.f32.gmra.mrb[6].mxu1 %v2746_v13 }
 0x3b1   : > { %4822 = vmatpush3.bf16.msra.mxu1 %v4819_v60  ;;  %4379 = vmatprep.mubr.f32.mxu1 %v6199_v43  ;;  %v3266_v39 = vpop.permute.xlu0 %3265 }
 0x3b2   : > { %4824 = vmatprep.subr.bf16.mxu1 %v6237_v41 }
 0x3b4   : > { %4380 = vmatmul.mubr.f32.vlgmr.msra.gmra.mrb[4].mxu1 %v6219_v25 }
 0x3b5   : > { %4826 = vmatpush3.bf16.msra.mxu1 %v6237_v41  ;;  %4382 = vmatprep.mubr.f32.mxu1 %v6221_v23  ;;  %v3276_v55 = vpop.permute.xlu0 %3275 }
 0x3b6   : > { %4828 = vmatprep.subr.bf16.mxu1 %v4787_v2 }
 0x3b8   : > { %4383 = vmatmul.mubr.f32.gmra.mrb[6].mxu1 %v6227_v59 }
 0x3b9   : > { %4830 = vmatpush3.bf16.msra.mxu1 %v4787_v2  ;;  %4393 = vmatprep.mubr.f32.mxu1 %v6199_v43 }
 0x3bc   : > { %4394 = vmatmul.mubr.f32.vlgmr.msra.gmra.mrb[4].mxu1 %v6219_v25 }
 0x3bd   : > { %4396 = vmatprep.mubr.f32.mxu1 %v6221_v23 }
 0x3c0   : > { %4397 = vmatmul.mubr.f32.gmra.mrb[6].mxu1 %v6227_v59 }
 0x48f   : > { %v4395_v3 = vpop.f32.mrb[4].mxu1 }
 0x490   : > { %v4839_v40 = vadd.f32 %v4395_v3, %v2621_v51  ;;  %v3237_v46 = vpop.f32.mrb[5].mxu1 }
 0x491   : > { %v4840_v4 = vadd.f32 %v3237_v46, %v2616_v26 }
 0x492   : > { %v3292_v19 = vand.u32 2147483647, %v4839_v40  ;;  %v3260_v49 = vmax.f32 %v4839_v40, 0.0  ;;  %v3284_v16 = vmul.f32 %v4839_v40, %v3271_v7 }
 0x493   : > { %v3291_v58 = vand.u32 2147483647, %v4840_v4  ;;  %v4398_v6 = vpop.f32.mrb[6].mxu1  ;;  %v3259_v13 = vmax.f32 %v4840_v4, 0.0  ;;  %v3283_v52 = vmul.f32 %v4840_v4, %v3266_v39 }
 0x494   : > { %v3296_v47 = vsub.f32 0.0, %v3292_v19  ;;  %v6275_v10 = vadd.f32 %v4398_v6, %v2631_v14  ;;  %v3249_v43 = vpop.f32.mrb[7].mxu1  ;;  %v3288_v9 = vsub.f32 %v3260_v49, %v3284_v16 }
 0x495   : > { %v3295_v25 = vsub.f32 0.0, %v3291_v58  ;;  %v6277_v45 = vadd.f32 %v3249_v43, %v2626_v11  ;;  %v3287_v42 = vsub.f32 %v3259_v13, %v3283_v52 }
 0x496   : > { %v3301_v23 = vmul.f32 1.442695, %v3296_v47  ;;  %v3294_v59 = vand.u32 2147483647, %v6275_v10  ;;  %v3262_v24 = vmax.f32 %v6275_v10, 0.0  ;;  %v3286_v20 = vmul.f32 %v6275_v10, %v3281_v12 }
 0x497   : > { %v3299_v33 = vmul.f32 1.442695, %v3295_v25  ;;  %v3293_v61 = vand.u32 2147483647, %v6277_v45  ;;  %v3261_v18 = vmax.f32 %v6277_v45, 0.0  ;;  %v3285_v51 = vmul.f32 %v6277_v45, %v3276_v55 }
 0x498   : > { %4975 = vpow2.f32 %v3301_v23  ;;  %v3298_v28 = vsub.f32 0.0, %v3294_v59  ;;  %v3290_v14 = vsub.f32 %v3262_v24, %v3286_v20 }
 0x499   : > { %4977 = vpow2.f32 %v3299_v33  ;;  %v3297_v21 = vsub.f32 0.0, %v3293_v61  ;;  %v3289_v23 = vsub.f32 %v3261_v18, %v3285_v51 }
 0x49a   : > { %v3305_v5 = vmul.f32 1.442695, %v3298_v28 }
 0x49b   : > { %v3303_v62 = vmul.f32 1.442695, %v3297_v21 }
 0x49c   : > { %4979 = vpow2.f32 %v3305_v5 }
 0x49d   : > { %4981 = vpow2.f32 %v3303_v62 }
 0x4a2   : > { %v4976_v32 = vpop.eup %4975 }
 0x4a3   : > { %v4978_v30 = vpop.eup %4977  ;;  %v3316_v8 = vadd.f32 1.0, %v4976_v32  ;;  %v3319_v0 = vmul.f32 -0.5, %v4976_v32  ;;  %v3322_v27 = vand.u32 2147483647, %v4976_v32 }
 0x4a4   : > { %v3307_v17 = vadd.f32 1.0, %v4978_v30  ;;  %v3310_v22 = vmul.f32 -0.5, %v4978_v30  ;;  %v3313_v54 = vand.u32 2147483647, %v4978_v30 }
 0x4a5   : > { %4983 = vlog2.f32 %v3316_v8  ;;  %v3320_v34 = vadd.f32 1.0, %v3319_v0  ;;  %vm3323_vm3 = vcmp.lt.f32.partialorder %v3322_v27, 0.0004427343 }
 0x4a6   : > { %v4980_v35 = vpop.eup %4979  ;;  %4985 = vlog2.f32 %v3307_v17  ;;  %v3311_v2 = vadd.f32 1.0, %v3310_v22  ;;  %vm3314_vm4 = vcmp.lt.f32.partialorder %v3313_v54, 0.0004427343  ;;  %v1082_v17 = vmul.f32 0.5, %v6142_v15 }
 0x4a7   : > { %v4982_v36 = vpop.eup %4981  ;;  %v3334_v41 = vadd.f32 1.0, %v4980_v35  ;;  %v3337_v50 = vmul.f32 -0.5, %v4980_v35  ;;  %v3321_v56 = vmul.f32 %v4976_v32, %v3320_v34  ;;  %v3340_v57 = vand.u32 2147483647, %v4980_v35 }
 0x4a8   : > { %v3325_v1 = vadd.f32 1.0, %v4982_v36  ;;  %v3328_v48 = vmul.f32 -0.5, %v4982_v36  ;;  %v3312_v63 = vmul.f32 %v4978_v30, %v3311_v2  ;;  %v3331_v26 = vand.u32 2147483647, %v4982_v36 }
 0x4a9   : > { %4987 = vlog2.f32 %v3334_v41  ;;  %v3338_v37 = vadd.f32 1.0, %v3337_v50  ;;  %vm3341_vm5 = vcmp.lt.f32.partialorder %v3340_v57, 0.0004427343  ;;  %v1083_v41 = vsub.f32 -14.703016, %v1082_v17 }
 0x4aa   : > { %4989 = vlog2.f32 %v3325_v1  ;;  %v3329_v44 = vadd.f32 1.0, %v3328_v48  ;;  %vm3332_vm6 = vcmp.lt.f32.partialorder %v3331_v26, 0.0004427343 }
 0x4ab   : > { %v3339_v6 = vmul.f32 %v4980_v35, %v3338_v37 }
 0x4ac   : > { %v3330_v10 = vmul.f32 %v4982_v36, %v3329_v44 }
 0x4af   : > { %v4984_v38 = vpop.eup %4983 }
 0x4b0   : > { %v4986_v53 = vpop.eup %4985  ;;  %v3318_v31 = vmul.f32 0.6931472, %v4984_v38 }
 0x4b1   : > { %v3309_v60 = vmul.f32 0.6931472, %v4986_v53 }
 0x4b2   : > { %v3324_v29 = vsel %vm3323_vm3, %v3321_v56, %v3318_v31 }
 0x4b3   : > { %v4988_v3 = vpop.eup %4987  ;;  %v3344_v40 = vadd.f32 %v3324_v29, %v3288_v9  ;;  %v3315_v46 = vsel %vm3314_vm4, %v3312_v63, %v3309_v60 }
 0x4b4   : > { %v4990_v4 = vpop.eup %4989  ;;  %v3343_v19 = vadd.f32 %v3315_v46, %v3287_v42  ;;  %v3336_v58 = vmul.f32 0.6931472, %v4988_v3 }
 0x4b5   : > { %v3348_v11 = vsub.f32 0.0, %v3344_v40  ;;  %v3327_v47 = vmul.f32 0.6931472, %v4990_v4 }
 0x4b6   : > { %v3347_v43 = vsub.f32 0.0, %v3343_v19  ;;  %v3342_v25 = vsel %vm3341_vm5, %v3339_v6, %v3336_v58 }
 0x4b7   : > { %v3333_v45 = vsel %vm3332_vm6, %v3330_v10, %v3327_v47  ;;  %v3346_v33 = vadd.f32 %v3342_v25, %v3290_v14 }
 0x4b8   : > { %v3351_v59 = vadd.f32 %v3348_v11, %v3347_v43  ;;  %v3345_v61 = vadd.f32 %v3333_v45, %v3289_v23 }
 0x4b9   : > { %v3350_v21 = vsub.f32 0.0, %v3346_v33 }
 0x4ba   : > { %v3349_v28 = vsub.f32 0.0, %v3345_v61 }
 0x4bc   : > { %v3352_v5 = vadd.f32 %v3351_v59, %v3349_v28 }
 0x4be   : > { %v3353_v62 = vadd.f32 %v3352_v5, %v3350_v21 }
 0x4c0   : > { %v3354_v32 = vrot.slane %v3353_v62, 4 }
 0x4c2   : > { %v3355_v30 = vadd.f32 %v3354_v32, %v3353_v62 }
 0x4c4   : > { %v3356_v8 = vrot.slane %v3355_v30, 2 }
 0x4c6   : > { %v3357_v35 = vadd.f32 %v3356_v8, %v3355_v30 }
 0x4c8   : > { %v3358_v36 = vrot.slane %v3357_v35, 1 }
 0x4ca   : > { %v3359_v7 = vadd.f32 %v3358_v36, %v3357_v35 }
 0x4cc   : > { %v3360_v0 = vadd.f32 %v3359_v7, %v1083_v41 }
 0x4ce   : > { %3361 = vst [vmem:[%s337_s21] sm:$0x1] %v3360_v0 }
 0x4cf   : > { %5004 = shalt.err (!%p5001_p5)
}
 0x4d0   : > { %s5005_s14 = scalar_lea.hbm %s6291_s24, 16  ;;  %s5009_s21 = scalar_lea.hbm %s6346_s8, 32 }
 0x4d1   : > { %p5006_p6 = scmp.ne.s32.totalorder %s6291_s24, %s5005_s14  ;;  %p5010_p10 = scmp.lt.u32.totalorder %s6291_s24, %s6346_s8 }
 0x4d2   : > { %p5011_p11 = scmp.lt.u32.totalorder %s5009_s21, %s5005_s14  ;;  %p5013_p13 = scmp.lt.u32.totalorder %s5005_s14, %s6291_s24 }
 0x4d3   : > { %p5007_p7 = pnand %p5006_p6, %p5162_p4 }
 0x4d4   : > { %p5012_p12 = por %p5011_p11, %p5010_p10 }
 0x4d5   : > { %p5008_p9 = pneg %p5007_p7 }
 0x4d6   : > { %p5014_p0 = por %p5013_p13, %p5012_p12 }
 0x4d8   : > { %p5015_p1 = pnand %p5014_p0, %p5008_p9 }
 0x4da   : > { %5018 = shalt.err (!%p5015_p1)
}
 0x4db   : > { %4913 = dma.vmem_to_hbm [thread:$0]  (%p5162_p4), %s6293_s22, 16, %s6291_s24, %s3363_s25  }
 0x4dc PF: > { %p4919_p2 = scmp.ge.s32.totalorder %s5069_s10, 2  ;;  %s3388_s26 = sand.u32 1, %s5049_s27  }
 0x4dd   : > { %s3389_s30 = scalar_lea.sflag [#allocation3], %s3388_s26 }
 0x4de   : > { %p4916_p3 = pnand %p4919_p2, %p5169_p8 }
 0x4e0   : > { %5044 = dma.done.wait (!%p4916_p3), %s3389_s30, 16  }
 0x4e1   : > { %5046 = vsyncadd (!%p4916_p3), %s3389_s30, 4294967280  ;;  %s21_s10 = sadd.s32 1, %s5069_s10   ;;  %s6566_s27 = smov %s5053_s28 }
 0x4e2   : > { %p18_p5 = scmp.ge.s32.totalorder %s21_s10, 4   ;;  %s6567_s28 = smov %s5057_s29 }
 0x4e3   : > { %s6568_s29 = smov %s5175_s18  ;;  %s6569_s30 = smov %s5065_s9 }
 0x4e4   : > { %s6570_s9 = smov %s6572_s13  ;;  %20 = sbr.rel (!%p18_p5) target bundleno = 4 (0x4), region = 90 }
 0x4eb   :  { %3393 = vsyncpa [#allocation3], 1 }
 0x4ec   :  { %3395 = vsyncpa [#allocation3 + $0x1], 1 }

</bundles_post_ra>
